<compile_context>
chip_gen: v7x
topology: tpu7x:2x2x1
jax: 0.10.0
libtpu: 0.0.40
codegen_flags: <defaults>
</compile_context>

<pallas_src>
import functools
import math

import jax
import jax.numpy as jnp
from jax.experimental import pallas as pl
from jax.experimental.pallas import tpu as pltpu


def _round_up(n: int, m: int) -> int:
    return ((n + m - 1) // m) * m


def _conv3x3_lrelu_kernel(x_ref, w_ref, o_ref, *, stride, negative_slope, th, wo):
    """One (batch, row-tile) grid step of conv3x3(stride) + LeakyReLU.

    x_ref: (1, s*s, Hq, Wq, Cin)  phase-decomposed, zero-padded input (whole
           image per batch element, VMEM-resident across the row-tile axis).
    w_ref: (9, Cin, Cout)         3x3 taps, tap index = 3*kh + kw.
    o_ref: (1, Cout, th*wo)       one row-tile of the NCHW-flat output
                                  (lane axis th*wo is a multiple of 128).
    """
    Cin = x_ref.shape[-1]
    s = stride
    r = pl.program_id(1)
    row0 = pl.multiple_of(r * th, th)            # first output row of this tile

    acc = None
    for kh in range(3):
        for kw in range(3):
            ph, oh = kh % s, kh // s
            pw, ow = kw % s, kw // s
            # Unit-stride slice of the resident VMEM block (no HBM traffic).
            patch = x_ref[0, ph * s + pw,
                          pl.ds(row0 + oh, th), pl.ds(ow, wo), :]
            patch = patch.reshape(th * wo, Cin)          # (M, K), native dtype
            d = jnp.dot(patch, w_ref[3 * kh + kw],       # MXU, f32 accumulate
                        preferred_element_type=jnp.float32)
            acc = d if acc is None else acc + d          # (M, Cout) f32

    out = jnp.where(acc >= 0, acc, negative_slope * acc)  # LeakyReLU
    # (M, Cout) -> (Cout, M): one in-VMEM transpose per tile buys a lane-dense
    # (multiple-of-128) store AND a direct NCHW result (no wrapper transpose).
    o_ref[0] = out.T.astype(o_ref.dtype)


def block_forward(x_nchw, weight_oihw, *, stride=1, upsample=False, lr_cf=0.2,
                  compute_dtype=None):
    """Forward pass of Block. x_nchw: (N, Cin, H, W); weight: (Cout, Cin, 3, 3).

    compute_dtype: optional dtype (e.g. jnp.bfloat16) for the conv operands;
    accumulation is always f32 and the output keeps the input dtype.
    """
    out_dtype = x_nchw.dtype
    KH = KW = 3
    s = int(stride)

    x = jnp.transpose(x_nchw, (0, 2, 3, 1))          # NHWC: channels on lanes
    w = weight_oihw
    if compute_dtype is not None:
        x = x.astype(compute_dtype)
        w = w.astype(compute_dtype)
    else:
        w = w.astype(x.dtype)

    if upsample:
        # bilinear, half-pixel centers == PyTorch align_corners=False.
        # TODO(synk): fuse the fixed-weight (0.25/0.75) 2x bilinear upsample into
        # the kernel so the 4x larger tensor never round-trips HBM.
        n, h, w_sp, c = x.shape
        x = jax.image.resize(x, (n, 2 * h, 2 * w_sp, c), method="bilinear")

    N, H, W, Cin = x.shape
    Cout = weight_oihw.shape[0]
    Ho = (H + 2 - KH) // s + 1
    Wo = (W + 2 - KW) // s + 1

    # ---- tile sizing --------------------------------------------------------
    Wo_pad = _round_up(Wo, 8)                  # sublane-aligned patch width
    lane_mult = 128 // math.gcd(Wo_pad, 128)   # th multiple => M % 128 == 0
    target_m, max_m = 512, 4096
    th = _round_up(max(1, -(-target_m // Wo_pad)), lane_mult)
    th = min(th, _round_up(Ho, lane_mult))
    while th > lane_mult and th * Wo_pad > max_m:
        th -= lane_mult
    Ho_pad = _round_up(Ho, th)
    n_row_tiles = Ho_pad // th
    M = th * Wo_pad

    # ---- phase decomposition of the zero-padded input -----------------------
    # xph[n, ph*s+pw, j, i, c] == xpad[n, j*s+ph, i*s+pw, c]; a 3x3 tap (kh,kw)
    # at output (ho, wo) reads xph[n, (kh%s)*s + kw%s, ho + kh//s, wo + kw//s, c],
    # so the kernel only ever needs unit-stride slices of a resident block.
    Hq = Ho_pad + (KH - 1) // s
    Wq = Wo_pad + (KW - 1) // s
    Hp, Wp = s * Hq, s * Wq
    xp = jnp.pad(x, ((0, 0), (1, max(Hp - H - 1, 0)),
                     (1, max(Wp - W - 1, 0)), (0, 0)))[:, :Hp, :Wp, :]
    xph = xp.reshape(N, Hq, s, Wq, s, Cin).transpose(0, 2, 4, 1, 3, 5)
    xph = xph.reshape(N, s * s, Hq, Wq, Cin)

    # (Cout, Cin, 3, 3) -> (9, Cin, Cout); tap index = 3*kh + kw.
    wk = jnp.transpose(w, (2, 3, 1, 0)).reshape(9, Cin, Cout)

    kernel = functools.partial(_conv3x3_lrelu_kernel, stride=s,
                               negative_slope=lr_cf, th=th, wo=Wo_pad)

    in_item = jnp.dtype(x.dtype).itemsize
    out_item = jnp.dtype(out_dtype).itemsize
    in_block = s * s * Hq * Wq * Cin * in_item
    w_bytes = 9 * Cin * Cout * in_item
    out_block = Cout * M * out_item
    # double-buffered blocks + f32 accumulator / patch temporaries + headroom
    vmem_need = 2 * (in_block + w_bytes + out_block) + 4 * M * (Cin + Cout) * 4
    vmem_limit = int(min(100 * 2**20, max(32 * 2**20, 2 * vmem_need)))
    # TODO(synk): v7x (64 MiB VMEM/TC) with production image sizes needs
    # halo-aware row tiling of the input block instead of whole-image residency.

    cost = pl.CostEstimate(
        flops=2 * N * Ho_pad * Wo_pad * 9 * Cin * Cout,
        transcendentals=0,
        bytes_accessed=N * in_block + w_bytes + N * n_row_tiles * out_block)

    out_flat = pl.pallas_call(
        kernel,
        out_shape=jax.ShapeDtypeStruct((N, Cout, Ho_pad * Wo_pad), out_dtype),
        grid_spec=pltpu.PrefetchScalarGridSpec(
            num_scalar_prefetch=0,
            grid=(N, n_row_tiles),
            in_specs=[
                # Whole phase-decomposed image per batch element; constant
                # block index along the row axis -> DMA'd once per batch
                # element and kept VMEM-resident.
                pl.BlockSpec((1, s * s, Hq, Wq, Cin),
                             lambda n, r: (n, 0, 0, 0, 0)),
                pl.BlockSpec((9, Cin, Cout), lambda n, r: (0, 0, 0)),
            ],
            out_specs=pl.BlockSpec((1, Cout, M), lambda n, r: (n, 0, r)),
        ),
        compiler_params=pltpu.CompilerParams(
            dimension_semantics=("parallel", "parallel"),
            vmem_limit_bytes=vmem_limit),
        cost_estimate=cost,
    )(xph, wk)

    out = out_flat.reshape(N, Cout, Ho_pad, Wo_pad)[:, :, :Ho, :Wo]
    return out                                        # NCHW


def _reference_forward(x_nchw, weight_oihw, *, stride=1, upsample=False, lr_cf=0.2):
    """Pure-JAX reference (lax conv, f32, highest precision)."""
    x = x_nchw
    if upsample:
        # TODO(synk): bit-level parity with torch F.interpolate(align_corners=False)
        # is asserted only by the known half-pixel equivalence of jax.image.resize.
        n, c, h, w = x.shape
        x = jax.image.resize(x, (n, c, 2 * h, 2 * w), method="bilinear")
    y = jax.lax.conv_general_dilated(
        x.astype(jnp.float32), weight_oihw.astype(jnp.float32),
        window_strides=(stride, stride), padding=((1, 1), (1, 1)),
        dimension_numbers=("NCHW", "OIHW", "NCHW"),
        precision=jax.lax.Precision.HIGHEST)
    return jnp.where(y >= 0, y, lr_cf * y)


if __name__ == "__main__":
    key = jax.random.PRNGKey(0)
    k_x, k_w1, k_w2, k_w3 = jax.random.split(key, 4)

    N, Cin, H, W = 2, 4, 16, 16
    Cout = 8

    x = jax.random.normal(k_x, (N, Cin, H, W), dtype=jnp.float32)

    # Deterministic conv weights (kaiming-uniform-like bound, bias=False).
    bound = float(1.0 / math.sqrt(Cin * 3 * 3))
    w1 = jax.random.uniform(k_w1, (Cout, Cin, 3, 3), minval=-bound, maxval=bound,
                            dtype=jnp.float32)
    w2 = jax.random.uniform(k_w2, (Cout, Cin, 3, 3), minval=-bound, maxval=bound,
                            dtype=jnp.float32)
    w3 = jax.random.uniform(k_w3, (Cout, Cin, 3, 3), minval=-bound, maxval=bound,
                            dtype=jnp.float32)

    # Block(4, 8)                   -- plain stride-1 block
    y0 = block_forward(x, w1, stride=1, upsample=False, lr_cf=0.2)
    # Block(4, 8, stride=2)         -- downsampling block
    y1 = block_forward(x, w2, stride=2, upsample=False, lr_cf=0.2)
    # Block(4, 8, upsample=True)    -- bilinear-upsampling block
    y2 = block_forward(x, w3, stride=1, upsample=True, lr_cf=0.2)
    # bf16 fast path (full-rate MXU, f32 accumulation)
    x_bf = x.astype(jnp.bfloat16)
    w_bf = w1.astype(jnp.bfloat16)
    y3 = block_forward(x_bf, w_bf, stride=1, upsample=False, lr_cf=0.2)
    jax.block_until_ready((y0, y1, y2, y3))

    # Sanity-check against the pure-JAX reference.
    r0 = _reference_forward(x, w1, stride=1, upsample=False, lr_cf=0.2)
    r1 = _reference_forward(x, w2, stride=2, upsample=False, lr_cf=0.2)
    r2 = _reference_forward(x, w3, stride=1, upsample=True, lr_cf=0.2)
    r3 = _reference_forward(x_bf.astype(jnp.float32), w_bf.astype(jnp.float32),
                            stride=1, upsample=False, lr_cf=0.2)

    assert y0.shape == (N, Cout, H, W), y0.shape
    assert y1.shape == (N, Cout, H // 2, W // 2), y1.shape
    assert y2.shape == (N, Cout, 2 * H, 2 * W), y2.shape
    assert y3.shape == (N, Cout, H, W), y3.shape
    assert jnp.allclose(y0, r0, atol=2e-2, rtol=2e-2)
    assert jnp.allclose(y1, r1, atol=2e-2, rtol=2e-2)
    assert jnp.allclose(y2, r2, atol=2e-2, rtol=2e-2)
    assert jnp.allclose(y3.astype(jnp.float32), r3, atol=3e-2, rtol=3e-2)

    print("KERNEL_OK")
</pallas_src>

<mosaic_0001>
module attributes {stable_mosaic.version = 11 : i64} {
  func.func @_conv3x3_lrelu_kernel(%arg0: i32, %arg1: i32, %arg2: memref<1x1x18x18x4xf32, #tpu.memory_space<vmem>>, %arg3: memref<9x4x8xf32, #tpu.memory_space<vmem>>, %arg4: memref<1x8x256xf32, #tpu.memory_space<vmem>>) attributes {dimension_semantics = [#tpu.dimension_semantics<parallel>, #tpu.dimension_semantics<parallel>], iteration_bounds = array<i64: 2, 1>, scalar_prefetch = 0 : i64, scratch_operands = 0 : i64, tpu.core_type = #tpu.core_type<tc>, window_params = [{transform_indices = @transform_0, window_bounds = array<i64: 1, 1, 18, 18, 4>}, {pipeline_mode = #tpu.pipeline_mode<synchronous>, transform_indices = @transform_1, window_bounds = array<i64: 9, 4, 8>}, {transform_indices = @transform_2, window_bounds = array<i64: 1, 8, 256>}]} {
    %c16_i32 = arith.constant 16 : i32
    %0 = arith.muli %arg1, %c16_i32 : i32
    %1 = tpu.assume_multiple %0, 16 : i32
    %c0_i32 = arith.constant 0 : i32
    %2 = arith.addi %1, %c0_i32 : i32
    %c0 = arith.constant 0 : index
    %c0_0 = arith.constant 0 : index
    %3 = arith.index_cast %2 : i32 to index
    %c0_1 = arith.constant 0 : index
    %c0_2 = arith.constant 0 : index
    %4 = vector.load %arg2[%c0, %c0_0, %3, %c0_1, %c0_2] : memref<1x1x18x18x4xf32, #tpu.memory_space<vmem>>, vector<1x1x16x16x4xf32>
    %5 = vector.shape_cast %4 : vector<1x1x16x16x4xf32> to vector<16x16x4xf32>
    %6 = vector.shape_cast %5 : vector<16x16x4xf32> to vector<256x4xf32>
    %c0_3 = arith.constant 0 : index
    %c0_4 = arith.constant 0 : index
    %c0_5 = arith.constant 0 : index
    %7 = vector.load %arg3[%c0_3, %c0_4, %c0_5] : memref<9x4x8xf32, #tpu.memory_space<vmem>>, vector<1x4x8xf32>
    %8 = vector.shape_cast %7 : vector<1x4x8xf32> to vector<4x8xf32>
    %cst = arith.constant dense<0.000000e+00> : vector<256x8xf32>
    %9 = tpu.matmul %6, %8, %cst {dimension_numbers = #tpu.dot_dimension_numbers<[1], [0], [0], [1], [0, 0, 1, 1], [], []>} : vector<256x4xf32>, vector<4x8xf32>, vector<256x8xf32> -> vector<256x8xf32>
    %c0_i32_6 = arith.constant 0 : i32
    %10 = arith.addi %1, %c0_i32_6 : i32
    %c0_7 = arith.constant 0 : index
    %c0_8 = arith.constant 0 : index
    %11 = arith.index_cast %10 : i32 to index
    %c1 = arith.constant 1 : index
    %c0_9 = arith.constant 0 : index
    %12 = vector.load %arg2[%c0_7, %c0_8, %11, %c1, %c0_9] : memref<1x1x18x18x4xf32, #tpu.memory_space<vmem>>, vector<1x1x16x16x4xf32>
    %13 = vector.shape_cast %12 : vector<1x1x16x16x4xf32> to vector<16x16x4xf32>
    %14 = vector.shape_cast %13 : vector<16x16x4xf32> to vector<256x4xf32>
    %c1_10 = arith.constant 1 : index
    %c0_11 = arith.constant 0 : index
    %c0_12 = arith.constant 0 : index
    %15 = vector.load %arg3[%c1_10, %c0_11, %c0_12] : memref<9x4x8xf32, #tpu.memory_space<vmem>>, vector<1x4x8xf32>
    %16 = vector.shape_cast %15 : vector<1x4x8xf32> to vector<4x8xf32>
    %cst_13 = arith.constant dense<0.000000e+00> : vector<256x8xf32>
    %17 = tpu.matmul %14, %16, %cst_13 {dimension_numbers = #tpu.dot_dimension_numbers<[1], [0], [0], [1], [0, 0, 1, 1], [], []>} : vector<256x4xf32>, vector<4x8xf32>, vector<256x8xf32> -> vector<256x8xf32>
    %18 = arith.addf %9, %17 : vector<256x8xf32>
    %c0_i32_14 = arith.constant 0 : i32
    %19 = arith.addi %1, %c0_i32_14 : i32
    %c0_15 = arith.constant 0 : index
    %c0_16 = arith.constant 0 : index
    %20 = arith.index_cast %19 : i32 to index
    %c2 = arith.constant 2 : index
    %c0_17 = arith.constant 0 : index
    %21 = vector.load %arg2[%c0_15, %c0_16, %20, %c2, %c0_17] : memref<1x1x18x18x4xf32, #tpu.memory_space<vmem>>, vector<1x1x16x16x4xf32>
    %22 = vector.shape_cast %21 : vector<1x1x16x16x4xf32> to vector<16x16x4xf32>
    %23 = vector.shape_cast %22 : vector<16x16x4xf32> to vector<256x4xf32>
    %c2_18 = arith.constant 2 : index
    %c0_19 = arith.constant 0 : index
    %c0_20 = arith.constant 0 : index
    %24 = vector.load %arg3[%c2_18, %c0_19, %c0_20] : memref<9x4x8xf32, #tpu.memory_space<vmem>>, vector<1x4x8xf32>
    %25 = vector.shape_cast %24 : vector<1x4x8xf32> to vector<4x8xf32>
    %cst_21 = arith.constant dense<0.000000e+00> : vector<256x8xf32>
    %26 = tpu.matmul %23, %25, %cst_21 {dimension_numbers = #tpu.dot_dimension_numbers<[1], [0], [0], [1], [0, 0, 1, 1], [], []>} : vector<256x4xf32>, vector<4x8xf32>, vector<256x8xf32> -> vector<256x8xf32>
    %27 = arith.addf %18, %26 : vector<256x8xf32>
    %c1_i32 = arith.constant 1 : i32
    %28 = arith.addi %1, %c1_i32 : i32
    %c0_22 = arith.constant 0 : index
    %c0_23 = arith.constant 0 : index
    %29 = arith.index_cast %28 : i32 to index
    %c0_24 = arith.constant 0 : index
    %c0_25 = arith.constant 0 : index
    %30 = vector.load %arg2[%c0_22, %c0_23, %29, %c0_24, %c0_25] : memref<1x1x18x18x4xf32, #tpu.memory_space<vmem>>, vector<1x1x16x16x4xf32>
    %31 = vector.shape_cast %30 : vector<1x1x16x16x4xf32> to vector<16x16x4xf32>
    %32 = vector.shape_cast %31 : vector<16x16x4xf32> to vector<256x4xf32>
    %c3 = arith.constant 3 : index
    %c0_26 = arith.constant 0 : index
    %c0_27 = arith.constant 0 : index
    %33 = vector.load %arg3[%c3, %c0_26, %c0_27] : memref<9x4x8xf32, #tpu.memory_space<vmem>>, vector<1x4x8xf32>
    %34 = vector.shape_cast %33 : vector<1x4x8xf32> to vector<4x8xf32>
    %cst_28 = arith.constant dense<0.000000e+00> : vector<256x8xf32>
    %35 = tpu.matmul %32, %34, %cst_28 {dimension_numbers = #tpu.dot_dimension_numbers<[1], [0], [0], [1], [0, 0, 1, 1], [], []>} : vector<256x4xf32>, vector<4x8xf32>, vector<256x8xf32> -> vector<256x8xf32>
    %36 = arith.addf %27, %35 : vector<256x8xf32>
    %c1_i32_29 = arith.constant 1 : i32
    %37 = arith.addi %1, %c1_i32_29 : i32
    %c0_30 = arith.constant 0 : index
    %c0_31 = arith.constant 0 : index
    %38 = arith.index_cast %37 : i32 to index
    %c1_32 = arith.constant 1 : index
    %c0_33 = arith.constant 0 : index
    %39 = vector.load %arg2[%c0_30, %c0_31, %38, %c1_32, %c0_33] : memref<1x1x18x18x4xf32, #tpu.memory_space<vmem>>, vector<1x1x16x16x4xf32>
    %40 = vector.shape_cast %39 : vector<1x1x16x16x4xf32> to vector<16x16x4xf32>
    %41 = vector.shape_cast %40 : vector<16x16x4xf32> to vector<256x4xf32>
    %c4 = arith.constant 4 : index
    %c0_34 = arith.constant 0 : index
    %c0_35 = arith.constant 0 : index
    %42 = vector.load %arg3[%c4, %c0_34, %c0_35] : memref<9x4x8xf32, #tpu.memory_space<vmem>>, vector<1x4x8xf32>
    %43 = vector.shape_cast %42 : vector<1x4x8xf32> to vector<4x8xf32>
    %cst_36 = arith.constant dense<0.000000e+00> : vector<256x8xf32>
    %44 = tpu.matmul %41, %43, %cst_36 {dimension_numbers = #tpu.dot_dimension_numbers<[1], [0], [0], [1], [0, 0, 1, 1], [], []>} : vector<256x4xf32>, vector<4x8xf32>, vector<256x8xf32> -> vector<256x8xf32>
    %45 = arith.addf %36, %44 : vector<256x8xf32>
    %c1_i32_37 = arith.constant 1 : i32
    %46 = arith.addi %1, %c1_i32_37 : i32
    %c0_38 = arith.constant 0 : index
    %c0_39 = arith.constant 0 : index
    %47 = arith.index_cast %46 : i32 to index
    %c2_40 = arith.constant 2 : index
    %c0_41 = arith.constant 0 : index
    %48 = vector.load %arg2[%c0_38, %c0_39, %47, %c2_40, %c0_41] : memref<1x1x18x18x4xf32, #tpu.memory_space<vmem>>, vector<1x1x16x16x4xf32>
    %49 = vector.shape_cast %48 : vector<1x1x16x16x4xf32> to vector<16x16x4xf32>
    %50 = vector.shape_cast %49 : vector<16x16x4xf32> to vector<256x4xf32>
    %c5 = arith.constant 5 : index
    %c0_42 = arith.constant 0 : index
    %c0_43 = arith.constant 0 : index
    %51 = vector.load %arg3[%c5, %c0_42, %c0_43] : memref<9x4x8xf32, #tpu.memory_space<vmem>>, vector<1x4x8xf32>
    %52 = vector.shape_cast %51 : vector<1x4x8xf32> to vector<4x8xf32>
    %cst_44 = arith.constant dense<0.000000e+00> : vector<256x8xf32>
    %53 = tpu.matmul %50, %52, %cst_44 {dimension_numbers = #tpu.dot_dimension_numbers<[1], [0], [0], [1], [0, 0, 1, 1], [], []>} : vector<256x4xf32>, vector<4x8xf32>, vector<256x8xf32> -> vector<256x8xf32>
    %54 = arith.addf %45, %53 : vector<256x8xf32>
    %c2_i32 = arith.constant 2 : i32
    %55 = arith.addi %1, %c2_i32 : i32
    %c0_45 = arith.constant 0 : index
    %c0_46 = arith.constant 0 : index
    %56 = arith.index_cast %55 : i32 to index
    %c0_47 = arith.constant 0 : index
    %c0_48 = arith.constant 0 : index
    %57 = vector.load %arg2[%c0_45, %c0_46, %56, %c0_47, %c0_48] : memref<1x1x18x18x4xf32, #tpu.memory_space<vmem>>, vector<1x1x16x16x4xf32>
    %58 = vector.shape_cast %57 : vector<1x1x16x16x4xf32> to vector<16x16x4xf32>
    %59 = vector.shape_cast %58 : vector<16x16x4xf32> to vector<256x4xf32>
    %c6 = arith.constant 6 : index
    %c0_49 = arith.constant 0 : index
    %c0_50 = arith.constant 0 : index
    %60 = vector.load %arg3[%c6, %c0_49, %c0_50] : memref<9x4x8xf32, #tpu.memory_space<vmem>>, vector<1x4x8xf32>
    %61 = vector.shape_cast %60 : vector<1x4x8xf32> to vector<4x8xf32>
    %cst_51 = arith.constant dense<0.000000e+00> : vector<256x8xf32>
    %62 = tpu.matmul %59, %61, %cst_51 {dimension_numbers = #tpu.dot_dimension_numbers<[1], [0], [0], [1], [0, 0, 1, 1], [], []>} : vector<256x4xf32>, vector<4x8xf32>, vector<256x8xf32> -> vector<256x8xf32>
    %63 = arith.addf %54, %62 : vector<256x8xf32>
    %c2_i32_52 = arith.constant 2 : i32
    %64 = arith.addi %1, %c2_i32_52 : i32
    %c0_53 = arith.constant 0 : index
    %c0_54 = arith.constant 0 : index
    %65 = arith.index_cast %64 : i32 to index
    %c1_55 = arith.constant 1 : index
    %c0_56 = arith.constant 0 : index
    %66 = vector.load %arg2[%c0_53, %c0_54, %65, %c1_55, %c0_56] : memref<1x1x18x18x4xf32, #tpu.memory_space<vmem>>, vector<1x1x16x16x4xf32>
    %67 = vector.shape_cast %66 : vector<1x1x16x16x4xf32> to vector<16x16x4xf32>
    %68 = vector.shape_cast %67 : vector<16x16x4xf32> to vector<256x4xf32>
    %c7 = arith.constant 7 : index
    %c0_57 = arith.constant 0 : index
    %c0_58 = arith.constant 0 : index
    %69 = vector.load %arg3[%c7, %c0_57, %c0_58] : memref<9x4x8xf32, #tpu.memory_space<vmem>>, vector<1x4x8xf32>
    %70 = vector.shape_cast %69 : vector<1x4x8xf32> to vector<4x8xf32>
    %cst_59 = arith.constant dense<0.000000e+00> : vector<256x8xf32>
    %71 = tpu.matmul %68, %70, %cst_59 {dimension_numbers = #tpu.dot_dimension_numbers<[1], [0], [0], [1], [0, 0, 1, 1], [], []>} : vector<256x4xf32>, vector<4x8xf32>, vector<256x8xf32> -> vector<256x8xf32>
    %72 = arith.addf %63, %71 : vector<256x8xf32>
    %c2_i32_60 = arith.constant 2 : i32
    %73 = arith.addi %1, %c2_i32_60 : i32
    %c0_61 = arith.constant 0 : index
    %c0_62 = arith.constant 0 : index
    %74 = arith.index_cast %73 : i32 to index
    %c2_63 = arith.constant 2 : index
    %c0_64 = arith.constant 0 : index
    %75 = vector.load %arg2[%c0_61, %c0_62, %74, %c2_63, %c0_64] : memref<1x1x18x18x4xf32, #tpu.memory_space<vmem>>, vector<1x1x16x16x4xf32>
    %76 = vector.shape_cast %75 : vector<1x1x16x16x4xf32> to vector<16x16x4xf32>
    %77 = vector.shape_cast %76 : vector<16x16x4xf32> to vector<256x4xf32>
    %c8 = arith.constant 8 : index
    %c0_65 = arith.constant 0 : index
    %c0_66 = arith.constant 0 : index
    %78 = vector.load %arg3[%c8, %c0_65, %c0_66] : memref<9x4x8xf32, #tpu.memory_space<vmem>>, vector<1x4x8xf32>
    %79 = vector.shape_cast %78 : vector<1x4x8xf32> to vector<4x8xf32>
    %cst_67 = arith.constant dense<0.000000e+00> : vector<256x8xf32>
    %80 = tpu.matmul %77, %79, %cst_67 {dimension_numbers = #tpu.dot_dimension_numbers<[1], [0], [0], [1], [0, 0, 1, 1], [], []>} : vector<256x4xf32>, vector<4x8xf32>, vector<256x8xf32> -> vector<256x8xf32>
    %81 = arith.addf %72, %80 : vector<256x8xf32>
    %cst_68 = arith.constant 0.000000e+00 : f32
    %82 = vector.broadcast %cst_68 : f32 to vector<256x8xf32>
    %83 = arith.cmpf oge, %81, %82 : vector<256x8xf32>
    %cst_69 = arith.constant 2.000000e-01 : f32
    %84 = vector.broadcast %cst_69 : f32 to vector<256x8xf32>
    %85 = arith.mulf %84, %81 : vector<256x8xf32>
    %86 = arith.select %83, %81, %85 : vector<256x8xi1>, vector<256x8xf32>
    %87 = tpu.transpose %86, [1, 0] : vector<256x8xf32> -> vector<8x256xf32>
    %c0_70 = arith.constant 0 : index
    %c0_71 = arith.constant 0 : index
    %c0_72 = arith.constant 0 : index
    %88 = vector.load %arg4[%c0_70, %c0_71, %c0_72] : memref<1x8x256xf32, #tpu.memory_space<vmem>>, vector<1x8x256xf32>
    %89 = vector.shape_cast %88 : vector<1x8x256xf32> to vector<8x256xf32>
    %90 = vector.shape_cast %87 : vector<8x256xf32> to vector<1x8x256xf32>
    tpu.vector_store %arg4[%c0_70, %c0_71, %c0_72], %90 {strides = array<i32>} : memref<1x8x256xf32, #tpu.memory_space<vmem>>, vector<1x8x256xf32>,
    return
  }
  func.func @transform_0(%arg0: i32, %arg1: i32) -> (i32, i32, i32, i32, i32) {
    %c0_i32 = arith.constant 0 : i32
    %c0_i32_0 = arith.constant 0 : i32
    %c0_i32_1 = arith.constant 0 : i32
    %c0_i32_2 = arith.constant 0 : i32
    %c0_i32_3 = arith.constant 0 : i32
    return %arg0, %c0_i32, %c0_i32_0, %c0_i32_1, %c0_i32_2 : i32, i32, i32, i32, i32
  }
  func.func @transform_1(%arg0: i32, %arg1: i32) -> (i32, i32, i32) {
    %c0_i32 = arith.constant 0 : i32
    %c0_i32_0 = arith.constant 0 : i32
    %c0_i32_1 = arith.constant 0 : i32
    %c0_i32_2 = arith.constant 0 : i32
    return %c0_i32, %c0_i32_0, %c0_i32_1 : i32, i32, i32
  }
  func.func @transform_2(%arg0: i32, %arg1: i32) -> (i32, i32, i32) {
    %c0_i32 = arith.constant 0 : i32
    %c0_i32_0 = arith.constant 0 : i32
    return %arg0, %c0_i32, %arg1 : i32, i32, i32
  }
}

</mosaic_0001>

<bundles_post_ra>
// kernel: tpu_custom_call.1
= control target key start
LH: loop header
LB: loop body
LE: loop exit
PB: predicated region body
PF: predicated region fallthrough
CT: control target
= control target key end

     0   :  { %7 = vsyncpa [#allocation3], 0  ;;  %s6623_s0 = inlined_call_operand.vmem [shape: f32[2,1,18,18,4], index: 0, kind: input, shape index: {}]   ;;  %s6624_s1 = inlined_call_operand.vmem [shape: f32[9,4,8], index: 1, kind: input, shape index: {}]   ;;  %s6625_s2 = inlined_call_operand.hbm [shape: f32[2,8,256], index: 2, kind: output, shape index: {}]  }
   0x1   :  { %9 = vsyncpa [#allocation3 + $0x1], 0  ;;  %s5539_s9 = smov 0   ;;  %s5541_s10 = smov 0  }
   0x2   :  { %s5543_s11 = smov 0   ;;  %s5545_s12 = smov 0  }
   0x3   :  { %s5547_s13 = smov 0   ;;  %s5549_s14 = smov 0  }
   0x4 LB: > { %s3872_s15 = sadd.s32 4294967295, %s5521_s14   ;;  %s3873_s16 = sadd.s32 4294967294, %s5521_s14   ;;  %s5521_s14 = sphi %s5549_s14, %s15_s14   ;;  %s5517_s13 = sphi %s5547_s13, %s6741_s13   ;;  %s5513_s12 = sphi %s5545_s12, %s6740_s12   ;;  %s5509_s11 = sphi %s5543_s11, %s6739_s11   ;;  %s5505_s10 = sphi %s5541_s10, %s6738_s10   ;;  %s5501_s9 = sphi %s5539_s9, %s6737_s9  }
   0x5   : > { %s27_s17 = sadd.s32 1, %s5517_s13  ;;  %s83_s18 = sadd.s32 1, %s5509_s11 }
   0x6   : > { %p29_p0 = scmp.ge.s32.totalorder %s27_s17, 2  ;;  %p93_p1 = scmp.ne.s32.totalorder %s5509_s11, %s5505_s10 }
   0x7   : > { %p94_p2 = scmp.eq.s32.totalorder %s3872_s15, 1  ;;  %p99_p3 = scmp.ne.s32.totalorder %s5505_s10, %s5501_s9 }
   0x8   : > { %s6743_s17 = smov (%p29_p0, %s27_s17), 0  ;;  %p100_p5 = scmp.eq.s32.totalorder %s3873_s16, 1 }
   0x9   : > { %p5579_p4 = por %p94_p2, %p93_p1  ;;  %s78_s20 = ssub.s32 %s5517_s13, %s6743_s17 }
   0xa   : > { %p3876_p6 = scmp.ge.s32.totalorder %s5521_s14, 1  ;;  %p81_p7 = scmp.eq.s32.totalorder %s78_s20, 0 }
   0xb   : > { %p5586_p8 = por %p100_p5, %p99_p3  ;;  %p129_p9 = scmp.lt.s32.totalorder %s5521_s14, 3 }
   0xc   : > { %s5592_s22 = scalar_select %p81_p7, %s5509_s11, %s83_s18  }
   0xd   : > { %p130_p10 = pnand %p3876_p6, %p129_p9 }
   0xf   : > { %133 = sbr.rel (%p130_p10) target bundleno = 648 (0x288), region = 28 }
  0x16   : > { %v3879_v0 = vld [vmem:[%s6624_s1 + $0x4] sm:$0xf]  ;;  %vm324_vm0 = vcmask 1043456   ;;  %v5600_v1 = vld [vmem:[%s6624_s1 + $0x10] sm:$0xf]  ;;  %p151_p11 = scmp.lt.s32.totalorder %s5513_s12, 1 }
  0x17   : > { %4679 = vmatprep.subr.msk.mxu1 %vm324_vm0, %v3879_v0  ;;  %4879 = vmatprep.subr.msk.mxu0 %vm324_vm0, %v5600_v1  ;;  %v192_v2 = vld [vmem:[%s6624_s1] sm:$0xf]  ;;  %v4144_v3 = vld [vmem:[%s6624_s1 + $0x14] sm:$0xf]  ;;  %vm227_vm1 = vcmask 31744   ;;  %s148_s28 = sand.u32 1, %s5505_s10  }
  0x18   : > { %4680 = vmatpush3.msk.msra.mxu1 %vm324_vm0, %v3879_v0  ;;  %4880 = vmatpush3.msk.msra.mxu0 %vm324_vm0, %v5600_v1  ;;  %s152_s3 = scalar_select %p151_p11, %s5513_s12, 1  ;;  %v4210_v9 = vld [vmem:[%s6624_s1 + $0x18] sm:$0xf]  ;;  %v5640_v10 = vld [vmem:[%s6624_s1 + $0x8] sm:$0xf] }
  0x19   : > { %4729 = vmatprep.subr.msk.mxu1 %vm324_vm0, %v192_v2  ;;  %4929 = vmatprep.subr.msk.mxu0 %vm324_vm0, %v4144_v3  ;;  %v5759_v28 = vld [vmem:[%s6624_s1 + $0x1c] sm:$0xf]  ;;  %v5922_v61 = vld [vmem:[%s6624_s1 + $0xc] sm:$0xf]  ;;  %s3877_s29 = sshll.u32 %s148_s28, 4  ;;  %s3776_s8 = scalar_lea.sflag [#allocation3], %s148_s28 }
  0x1a   : > { %s5387_s4 = smul.u32 432, %s152_s3  ;;  %s150_s30 = scalar_lea.vmem [#allocation2], %s3877_s29 }
  0x1b   : > { %s3792_s3 = sshll.u32 %s150_s30, 4  ;;  %s5523_s16 = smov [#allocation2]   ;;  %s6573_s3 = int_to_ptr.vmem [resolvable:$true] %s3792_s3 }
  0x1c   : > { %s5621_s7 = scalar_lea.vmem %s6623_s0, %s5387_s4  ;;  %s4381_s4 = sshll.u32 %s5513_s12, 8 }
  0x1d   : > { %v193_v4 = vld [vmem:[%s5621_s7 + $0x1] sm:$0xff]  ;;  %v4046_v5 = vld [vmem:[%s5621_s7 + $0x19] sm:$0xff]  ;;  %v194_v6 = vld [vmem:[%s5621_s7 + $0x9] sm:$0xff]  ;;  %s5443_s15 = scalar_lea.vmem %s6573_s3, 256  ;;  %s5447_s12 = sshll.u32 %s5523_s16, 4  ;;  %s5448_s12 = int_to_ptr.vmem [resolvable:$false] %s5447_s12 }
  0x1e   : > { %4681 = vmatprep.mubr.msk.f32.mxu1 %vm227_vm1, %v193_v4  ;;  %4881 = vmatprep.mubr.msk.f32.mxu0 %vm227_vm1, %v4046_v5  ;;  %v4047_v7 = vld [vmem:[%s5621_s7 + $0x21] sm:$0xff]  ;;  %v5630_v8 = vld [vmem:[%s5621_s7 + $0x31] sm:$0xff]  ;;  %v5645_v11 = vld [vmem:[%s5621_s7 + $0x39] sm:$0xff]  ;;  %p5444_p12 = scmp.ne.s32.totalorder %s6573_s3, %s5443_s15  ;;  %s5449_s18 = scalar_lea.vmem %s5448_s12, 512 }
  0x1f   : > { %4682 = vmatmul.mubr.msk.f32.vlgmr.msra.gmra.mrb[0].mxu1 %vm227_vm1, %v194_v6  ;;  %4882 = vmatmul.mubr.msk.f32.vlgmr.msra.gmra.mrb[0].mxu0 %vm227_vm1, %v4047_v7  ;;  %v5651_v12 = vld [vmem:[%s5621_s7 + $0x49] sm:$0xff]  ;;  %v5664_v13 = vld [vmem:[%s5621_s7 + $0x51] sm:$0xff]  ;;  %v5667_v14 = vld [vmem:[%s5621_s7 + $0x61] sm:$0xff]  ;;  %p5450_p1 = scmp.lt.s32.totalorder %s6573_s3, %s5448_s12  ;;  %p5451_p2 = scmp.lt.s32.totalorder %s5449_s18, %s5443_s15 }
  0x20   : > { %4730 = vmatpush3.msk.msra.mxu1 %vm324_vm0, %v192_v2  ;;  %4930 = vmatpush3.msk.msra.mxu0 %vm324_vm0, %v4144_v3  ;;  %v5678_v15 = vld [vmem:[%s5621_s7 + $0x69] sm:$0xff]  ;;  %v5681_v16 = vld [vmem:[%s5621_s7 + $0x79] sm:$0xff]  ;;  %v5692_v17 = vld [vmem:[%s5621_s7 + $0x81] sm:$0xff]  ;;  %p5445_p13 = pnand %p5444_p12, %p5579_p4 }
  0x21   : > { %4684 = vmatprep.mubr.msk.f32.mxu1 %vm227_vm1, %v4046_v5  ;;  %4884 = vmatprep.mubr.msk.f32.mxu0 %vm227_vm1, %v5630_v8  ;;  %v5695_v18 = vld [vmem:[%s5621_s7 + $0x91] sm:$0xff]  ;;  %v5706_v19 = vld [vmem:[%s5621_s7 + $0x99] sm:$0xff]  ;;  %v5709_v20 = vld [vmem:[%s5621_s7 + $0xa9] sm:$0xff]  ;;  %p5452_p3 = por %p5451_p2, %p5450_p1 }
  0x22   : > { %4979 = vmatprep.subr.msk.mxu0 %vm324_vm0, %v4210_v9  ;;  %4779 = vmatprep.subr.msk.mxu1 %vm324_vm0, %v5640_v10  ;;  %v5720_v21 = vld [vmem:[%s5621_s7 + $0xb1] sm:$0xff]  ;;  %v5723_v22 = vld [vmem:[%s5621_s7 + $0xc1] sm:$0xff]  ;;  %v5734_v23 = vld [vmem:[%s5621_s7 + $0xc9] sm:$0xff]  ;;  %p5446_p0 = pneg %p5445_p13 }
  0x23   : > { %4685 = vmatmul.mubr.msk.f32.gmra.mrb[2].mxu1 %vm227_vm1, %v4047_v7  ;;  %4885 = vmatmul.mubr.msk.f32.gmra.mrb[2].mxu0 %vm227_vm1, %v5645_v11  ;;  %v5737_v24 = vld [vmem:[%s5621_s7 + $0x1a] sm:$0xff]  ;;  %v5748_v25 = vld [vmem:[%s5621_s7 + $0x22] sm:$0xff]  ;;  %v5754_v27 = vld [vmem:[%s5621_s7 + $0x32] sm:$0xff] }
  0x24   : > { %4687 = vmatprep.mubr.msk.f32.mxu1 %vm227_vm1, %v5630_v8  ;;  %4887 = vmatprep.mubr.msk.f32.mxu0 %vm227_vm1, %v5651_v12  ;;  %v5751_v26 = vld [vmem:[%s5621_s7 + $0xd9] sm:$0xff]  ;;  %v5769_v29 = vld [vmem:[%s5621_s7 + $0xe1] sm:$0xff]  ;;  %v5777_v31 = vld [vmem:[%s5621_s7 + $0xf1] sm:$0xff]  ;;  %p5453_p5 = pnand %p5452_p3, %p5446_p0 }
  0x25   : > { %6673 = vst [vmem:[#allocation5_spill] sm:$0xff] %v5769_v29  ;;  %v5772_v30 = vld [vmem:[%s5621_s7 + $0x3a] sm:$0xff]  ;;  %6674 = vst [vmem:[#allocation6_spill] sm:$0xff] %v5777_v31  ;;  %v5780_v32 = vld [vmem:[%s5621_s7 + $0x4a] sm:$0xff] }
  0x26   : > { %v5793_v33 = vld [vmem:[%s5621_s7 + $0xf9] sm:$0xff]  ;;  %v5799_v35 = vld [vmem:[%s5621_s7 + $0x109] sm:$0xff]  ;;  %v5813_v37 = vld [vmem:[%s5621_s7 + $0x111] sm:$0xff] }
  0x27   : > { %4688 = vmatmul.mubr.msk.f32.gmra.mrb[4].mxu1 %vm227_vm1, %v5645_v11  ;;  %4888 = vmatmul.mubr.msk.f32.gmra.mrb[4].mxu0 %vm227_vm1, %v5664_v13  ;;  %6675 = vst [vmem:[#allocation7_spill] sm:$0xff] %v5793_v33  ;;  %v5796_v34 = vld [vmem:[%s5621_s7 + $0x52] sm:$0xff]  ;;  %6676 = vst [vmem:[#allocation8_spill] sm:$0xff] %v5799_v35  ;;  %v5802_v36 = vld [vmem:[%s5621_s7 + $0x62] sm:$0xff] }
  0x28   : > { %4690 = vmatprep.mubr.msk.f32.mxu1 %vm227_vm1, %v5651_v12  ;;  %4890 = vmatprep.mubr.msk.f32.mxu0 %vm227_vm1, %v5667_v14  ;;  %6677 = vst [vmem:[#allocation9_spill] sm:$0xff] %v5813_v37  ;;  %v5816_v38 = vld [vmem:[%s5621_s7 + $0x6a] sm:$0xff]  ;;  %v5819_v39 = vld [vmem:[%s5621_s7 + $0x121] sm:$0xff]  ;;  %v5839_v43 = vld [vmem:[%s5621_s7 + $0x139] sm:$0xff] }
  0x29   : > { %6678 = vst [vmem:[#allocation10_spill] sm:$0xff] %v5819_v39  ;;  %v5822_v40 = vld [vmem:[%s5621_s7 + $0x7a] sm:$0xff]  ;;  %v5833_v41 = vld [vmem:[%s5621_s7 + $0x129] sm:$0xff]  ;;  %6680 = vst [vmem:[#allocation12_spill] sm:$0xff] %v5839_v43 }
  0x2a   : > { %6679 = vst [vmem:[#allocation11_spill] sm:$0xff] %v5833_v41  ;;  %v5836_v42 = vld [vmem:[%s5621_s7 + $0x82] sm:$0xff]  ;;  %v5842_v44 = vld [vmem:[%s5621_s7 + $0x92] sm:$0xff]  ;;  %v5856_v46 = vld [vmem:[%s5621_s7 + $0x9a] sm:$0xff] }
  0x2b   : > { %4691 = vmatmul.mubr.msk.f32.gmra.mrb[6].mxu1 %vm227_vm1, %v5664_v13  ;;  %4891 = vmatmul.mubr.msk.f32.gmra.mrb[6].mxu0 %vm227_vm1, %v5678_v15  ;;  %v5853_v45 = vld [vmem:[%s5621_s7 + $0x141] sm:$0xff]  ;;  %v5859_v47 = vld [vmem:[%s5621_s7 + $0x151] sm:$0xff]  ;;  %v5873_v49 = vld [vmem:[%s5621_s7 + $0x159] sm:$0xff] }
  0x2c   : > { %4693 = vmatprep.mubr.msk.f32.mxu1 %vm227_vm1, %v5667_v14  ;;  %4893 = vmatprep.mubr.msk.f32.mxu0 %vm227_vm1, %v5681_v16  ;;  %6681 = vst [vmem:[#allocation13_spill] sm:$0xff] %v5853_v45  ;;  %6682 = vst [vmem:[#allocation14_spill] sm:$0xff] %v5859_v47  ;;  %v5862_v48 = vld [vmem:[%s5621_s7 + $0xaa] sm:$0xff]  ;;  %v5876_v50 = vld [vmem:[%s5621_s7 + $0xb2] sm:$0xff] }
  0x2d   : > { %6683 = vst [vmem:[#allocation15_spill] sm:$0xff] %v5873_v49  ;;  %v5879_v51 = vld [vmem:[%s5621_s7 + $0x169] sm:$0xff]  ;;  %v5893_v53 = vld [vmem:[%s5621_s7 + $0x171] sm:$0xff]  ;;  %v160_v55 = vld [vmem:[%s5621_s7] sm:$0xff] }
  0x2e   : > { %6684 = vst [vmem:[#allocation16_spill] sm:$0xff] %v5879_v51  ;;  %v5882_v52 = vld [vmem:[%s5621_s7 + $0xc2] sm:$0xff]  ;;  %6685 = vst [vmem:[#allocation17_spill] sm:$0xff] %v5893_v53  ;;  %v5896_v54 = vld [vmem:[%s5621_s7 + $0xca] sm:$0xff] }
  0x2f   : > { %4694 = vmatmul.mubr.msk.f32.gmra.mrb[8].mxu1 %vm227_vm1, %v5678_v15  ;;  %4894 = vmatmul.mubr.msk.f32.gmra.mrb[8].mxu0 %vm227_vm1, %v5692_v17  ;;  %v5900_v56 = vld [vmem:[%s5621_s7 + $0xda] sm:$0xff]  ;;  %v161_v57 = vld [vmem:[%s5621_s7 + $0x8] sm:$0xff]  ;;  %v5917_v60 = vld [vmem:[%s5621_s7 + $0xf2] sm:$0xff] }
  0x30   : > { %4696 = vmatprep.mubr.msk.f32.mxu1 %vm227_vm1, %v5681_v16  ;;  %4896 = vmatprep.mubr.msk.f32.mxu0 %vm227_vm1, %v5695_v18  ;;  %v5911_v58 = vld [vmem:[%s5621_s7 + $0xe2] sm:$0xff]  ;;  %v5914_v59 = vld [vmem:[%s5621_s7 + $0x18] sm:$0xff]  ;;  %v5940_v0 = vld [vmem:[%s5621_s7 + $0x30] sm:$0xff] }
  0x31   : > { %6686 = vst [vmem:[#allocation18_spill] sm:$0xff] %v5914_v59  ;;  %v5932_v62 = vld [vmem:[%s5621_s7 + $0x20] sm:$0xff]  ;;  %6688 = vst [vmem:[#allocation20_spill] sm:$0xff] %v5940_v0  ;;  %v5943_v2 = vld [vmem:[%s5621_s7 + $0x10a] sm:$0xff] }
  0x32   : > { %6687 = vst [vmem:[#allocation19_spill] sm:$0xff] %v5932_v62  ;;  %v5935_v63 = vld [vmem:[%s5621_s7 + $0xfa] sm:$0xff]  ;;  %v5959_v4 = vld [vmem:[%s5621_s7 + $0x112] sm:$0xff]  ;;  %v5962_v5 = vld [vmem:[%s5621_s7 + $0x48] sm:$0xff] }
  0x33   : > { %4697 = vmatmul.mubr.msk.f32.gmra.mrb[10].mxu1 %vm227_vm1, %v5692_v17  ;;  %4897 = vmatmul.mubr.msk.f32.gmra.mrb[10].mxu0 %vm227_vm1, %v5706_v19  ;;  %v5956_v3 = vld [vmem:[%s5621_s7 + $0x38] sm:$0xff]  ;;  %6690 = vst [vmem:[#allocation22_spill] sm:$0xff] %v5962_v5  ;;  %v5965_v6 = vld [vmem:[%s5621_s7 + $0x122] sm:$0xff]  ;;  %v5976_v7 = vld [vmem:[%s5621_s7 + $0x50] sm:$0xff] }
  0x34   : > { %4699 = vmatprep.mubr.msk.f32.mxu1 %vm227_vm1, %v5695_v18  ;;  %4899 = vmatprep.mubr.msk.f32.mxu0 %vm227_vm1, %v5709_v20  ;;  %6689 = vst [vmem:[#allocation21_spill] sm:$0xff] %v5956_v3  ;;  %6691 = vst [vmem:[#allocation23_spill] sm:$0xff] %v5976_v7 }
  0x37   : > { %4700 = vmatmul.mubr.msk.f32.gmra.mrb[12].mxu1 %vm227_vm1, %v5706_v19  ;;  %4900 = vmatmul.mubr.msk.f32.gmra.mrb[12].mxu0 %vm227_vm1, %v5720_v21 }
  0x38   : > { %4702 = vmatprep.mubr.msk.f32.mxu1 %vm227_vm1, %v5709_v20  ;;  %4902 = vmatprep.mubr.msk.f32.mxu0 %vm227_vm1, %v5723_v22 }
  0x3b   : > { %4703 = vmatmul.mubr.msk.f32.gmra.mrb[14].mxu1 %vm227_vm1, %v5720_v21  ;;  %4903 = vmatmul.mubr.msk.f32.gmra.mrb[14].mxu0 %vm227_vm1, %v5734_v23 }
  0x3c   : > { %4705 = vmatprep.mubr.msk.f32.mxu1 %vm227_vm1, %v5723_v22  ;;  %4931 = vmatprep.mubr.msk.f32.mxu0 %vm227_vm1, %v5737_v24 }
  0x3f   : > { %4706 = vmatmul.mubr.msk.f32.gmra.mrb[16].mxu1 %vm227_vm1, %v5734_v23  ;;  %4932 = vmatmul.mubr.msk.f32.vlgmr.msra.gmra.mrb[0].mxu0 %vm227_vm1, %v5748_v25 }
  0x40   : > { %4980 = vmatpush3.msk.msra.mxu0 %vm324_vm0, %v4210_v9  ;;  %4708 = vmatprep.mubr.msk.f32.mxu1 %vm227_vm1, %v5751_v26  ;;  %v5979_v9 = vld [vmem:[%s5621_s7 + $0x12a] sm:$0xff] }
  0x41   : > { %4934 = vmatprep.mubr.msk.f32.mxu0 %vm227_vm1, %v5754_v27  ;;  %5029 = vmatprep.subr.msk.mxu0 %vm324_vm0, %v5759_v28 }
  0x43   : > { %4709 = vmatmul.mubr.msk.f32.gmra.mrb[18].mxu1 %vm227_vm1, %v5769_v29  ;;  %4935 = vmatmul.mubr.msk.f32.gmra.mrb[2].mxu0 %vm227_vm1, %v5772_v30  ;;  %v6076_v29 = vld [vmem:[%s5621_s7 + $0xd8] sm:$0xff] }
  0x44   : > { %4711 = vmatprep.mubr.msk.f32.mxu1 %vm227_vm1, %v5777_v31  ;;  %4937 = vmatprep.mubr.msk.f32.mxu0 %vm227_vm1, %v5780_v32  ;;  %v6059_v31 = vld [vmem:[%s5621_s7 + $0x18a] sm:$0xff] }
  0x45   : > { %6702 = vst [vmem:[#allocation34_spill] sm:$0xff] %v6059_v31 }
  0x47   : > { %4712 = vmatmul.mubr.msk.f32.gmra.mrb[20].mxu1 %vm227_vm1, %v5793_v33  ;;  %4938 = vmatmul.mubr.msk.f32.gmra.mrb[4].mxu0 %vm227_vm1, %v5796_v34  ;;  %v6045_v33 = vld [vmem:[%s5621_s7 + $0x182] sm:$0xff] }
  0x48   : > { %4714 = vmatprep.mubr.msk.f32.mxu1 %vm227_vm1, %v5799_v35  ;;  %4940 = vmatprep.mubr.msk.f32.mxu0 %vm227_vm1, %v5802_v36  ;;  %v6042_v35 = vld [vmem:[%s5621_s7 + $0xa8] sm:$0xff]  ;;  %6700 = vst [vmem:[#allocation32_spill] sm:$0xff] %v6045_v33 }
  0x49   : > { %6699 = vst [vmem:[#allocation31_spill] sm:$0xff] %v6042_v35 }
  0x4b   : > { %4715 = vmatmul.mubr.msk.f32.gmra.mrb[22].mxu1 %vm227_vm1, %v5813_v37  ;;  %4941 = vmatmul.mubr.msk.f32.gmra.mrb[6].mxu0 %vm227_vm1, %v5816_v38  ;;  %v6039_v37 = vld [vmem:[%s5621_s7 + $0x172] sm:$0xff] }
  0x4c   : > { %4717 = vmatprep.mubr.msk.f32.mxu1 %vm227_vm1, %v5819_v39  ;;  %4943 = vmatprep.mubr.msk.f32.mxu0 %vm227_vm1, %v5822_v40  ;;  %v6036_v39 = vld [vmem:[%s5621_s7 + $0x98] sm:$0xff]  ;;  %6698 = vst [vmem:[#allocation30_spill] sm:$0xff] %v6039_v37 }
  0x4d   : > { %6697 = vst [vmem:[#allocation29_spill] sm:$0xff] %v6036_v39 }
  0x4f   : > { %4718 = vmatmul.mubr.msk.f32.gmra.mrb[24].mxu1 %vm227_vm1, %v5833_v41  ;;  %4944 = vmatmul.mubr.msk.f32.gmra.mrb[8].mxu0 %vm227_vm1, %v5836_v42  ;;  %v6025_v41 = vld [vmem:[%s5621_s7 + $0x16a] sm:$0xff] }
  0x50   : > { %4720 = vmatprep.mubr.msk.f32.mxu1 %vm227_vm1, %v5839_v43  ;;  %4946 = vmatprep.mubr.msk.f32.mxu0 %vm227_vm1, %v5842_v44  ;;  %v6022_v43 = vld [vmem:[%s5621_s7 + $0x90] sm:$0xff] }
  0x51   : > { %6696 = vst [vmem:[#allocation28_spill] sm:$0xff] %v6022_v43 }
  0x53   : > { %4721 = vmatmul.mubr.msk.f32.gmra.mrb[26].mxu1 %vm227_vm1, %v5853_v45  ;;  %4947 = vmatmul.mubr.msk.f32.gmra.mrb[10].mxu0 %vm227_vm1, %v5856_v46  ;;  %v6019_v45 = vld [vmem:[%s5621_s7 + $0x15a] sm:$0xff] }
  0x54   : > { %4723 = vmatprep.mubr.msk.f32.mxu1 %vm227_vm1, %v5859_v47  ;;  %4949 = vmatprep.mubr.msk.f32.mxu0 %vm227_vm1, %v5862_v48  ;;  %v6016_v47 = vld [vmem:[%s5621_s7 + $0x80] sm:$0xff] }
  0x55   : > { %6695 = vst [vmem:[#allocation27_spill] sm:$0xff] %v6016_v47 }
  0x57   : > { %4724 = vmatmul.mubr.msk.f32.gmra.mrb[28].mxu1 %vm227_vm1, %v5873_v49  ;;  %4950 = vmatmul.mubr.msk.f32.gmra.mrb[12].mxu0 %vm227_vm1, %v5876_v50  ;;  %v6005_v49 = vld [vmem:[%s5621_s7 + $0x152] sm:$0xff] }
  0x58   : > { %4726 = vmatprep.mubr.msk.f32.mxu1 %vm227_vm1, %v5879_v51  ;;  %4952 = vmatprep.mubr.msk.f32.mxu0 %vm227_vm1, %v5882_v52  ;;  %v6002_v51 = vld [vmem:[%s5621_s7 + $0x78] sm:$0xff] }
  0x59   : > { %6694 = vst [vmem:[#allocation26_spill] sm:$0xff] %v6002_v51 }
  0x5b   : > { %4727 = vmatmul.mubr.msk.f32.gmra.mrb[30].mxu1 %vm227_vm1, %v5893_v53  ;;  %4953 = vmatmul.mubr.msk.f32.gmra.mrb[14].mxu0 %vm227_vm1, %v5896_v54  ;;  %v5999_v53 = vld [vmem:[%s5621_s7 + $0x142] sm:$0xff] }
  0x5c   : > { %4731 = vmatprep.mubr.msk.f32.mxu1 %vm227_vm1, %v160_v55  ;;  %4955 = vmatprep.mubr.msk.f32.mxu0 %vm227_vm1, %v5900_v56  ;;  %v5985_v55 = vld [vmem:[%s5621_s7 + $0x13a] sm:$0xff] }
  0x5f   : > { %4732 = vmatmul.mubr.msk.f32.vlgmr.msra.gmra.mrb[0].mxu1 %vm227_vm1, %v161_v57  ;;  %4956 = vmatmul.mubr.msk.f32.gmra.mrb[16].mxu0 %vm227_vm1, %v5911_v58  ;;  %v5996_v57 = vld [vmem:[%s5621_s7 + $0x68] sm:$0xff] }
  0x60   : > { %4780 = vmatpush3.msk.msra.mxu1 %vm324_vm0, %v5640_v10  ;;  %4734 = vmatprep.mubr.msk.f32.mxu1 %vm227_vm1, %v5914_v59  ;;  %v5982_v10 = vld [vmem:[%s5621_s7 + $0x60] sm:$0xff]  ;;  %6693 = vst [vmem:[#allocation25_spill] sm:$0xff] %v5996_v57 }
  0x61   : > { %4958 = vmatprep.mubr.msk.f32.mxu0 %vm227_vm1, %v5917_v60  ;;  %4829 = vmatprep.subr.msk.mxu1 %vm324_vm0, %v5922_v61  ;;  %6692 = vst [vmem:[#allocation24_spill] sm:$0xff] %v5982_v10  ;;  %v6062_v59 = vld [vmem:[%s5621_s7 + $0xc0] sm:$0xff] }
  0x63   : > { %4735 = vmatmul.mubr.msk.f32.gmra.mrb[2].mxu1 %vm227_vm1, %v5932_v62  ;;  %4959 = vmatmul.mubr.msk.f32.gmra.mrb[18].mxu0 %vm227_vm1, %v5935_v63  ;;  %v6056_v62 = vld [vmem:[%s5621_s7 + $0xb0] sm:$0xff] }
  0x64   : > { %4737 = vmatprep.mubr.msk.f32.mxu1 %vm227_vm1, %v5940_v0  ;;  %4961 = vmatprep.mubr.msk.f32.mxu0 %vm227_vm1, %v5943_v2  ;;  %6701 = vst [vmem:[#allocation33_spill] sm:$0xff] %v6056_v62 }
  0x67   : > { %4738 = vmatmul.mubr.msk.f32.gmra.mrb[4].mxu1 %vm227_vm1, %v5956_v3  ;;  %4962 = vmatmul.mubr.msk.f32.gmra.mrb[20].mxu0 %vm227_vm1, %v5959_v4 }
  0x68   : > { %4740 = vmatprep.mubr.msk.f32.mxu1 %vm227_vm1, %v5962_v5  ;;  %4964 = vmatprep.mubr.msk.f32.mxu0 %vm227_vm1, %v5965_v6 }
  0x6b   : > { %4741 = vmatmul.mubr.msk.f32.gmra.mrb[6].mxu1 %vm227_vm1, %v5976_v7  ;;  %4965 = vmatmul.mubr.msk.f32.gmra.mrb[22].mxu0 %vm227_vm1, %v5979_v9 }
  0x6c   : > { %4743 = vmatprep.mubr.msk.f32.mxu1 %vm227_vm1, %v5982_v10  ;;  %4967 = vmatprep.mubr.msk.f32.mxu0 %vm227_vm1, %v5985_v55 }
  0x6f   : > { %4744 = vmatmul.mubr.msk.f32.gmra.mrb[8].mxu1 %vm227_vm1, %v5996_v57  ;;  %4968 = vmatmul.mubr.msk.f32.gmra.mrb[24].mxu0 %vm227_vm1, %v5999_v53 }
  0x70   : > { %4746 = vmatprep.mubr.msk.f32.mxu1 %vm227_vm1, %v6002_v51  ;;  %4970 = vmatprep.mubr.msk.f32.mxu0 %vm227_vm1, %v6005_v49 }
  0x73   : > { %4747 = vmatmul.mubr.msk.f32.gmra.mrb[10].mxu1 %vm227_vm1, %v6016_v47  ;;  %4971 = vmatmul.mubr.msk.f32.gmra.mrb[26].mxu0 %vm227_vm1, %v6019_v45 }
  0x74   : > { %4749 = vmatprep.mubr.msk.f32.mxu1 %vm227_vm1, %v6022_v43  ;;  %4973 = vmatprep.mubr.msk.f32.mxu0 %vm227_vm1, %v6025_v41 }
  0x77   : > { %4750 = vmatmul.mubr.msk.f32.gmra.mrb[12].mxu1 %vm227_vm1, %v6036_v39  ;;  %4974 = vmatmul.mubr.msk.f32.gmra.mrb[28].mxu0 %vm227_vm1, %v6039_v37  ;;  %v6081_v37 = vld [vmem:[%s6624_s1 + $0x20] sm:$0xf] }
  0x78   : > { %4752 = vmatprep.mubr.msk.f32.mxu1 %vm227_vm1, %v6042_v35  ;;  %4976 = vmatprep.mubr.msk.f32.mxu0 %vm227_vm1, %v6045_v33  ;;  %v6073_v33 = vld [vmem:[%s5621_s7 + $0xc8] sm:$0xff] }
  0x79   : > { %6703 = vst [vmem:[#allocation35_spill] sm:$0xff] %v6073_v33 }
  0x7b   : > { %4753 = vmatmul.mubr.msk.f32.gmra.mrb[14].mxu1 %vm227_vm1, %v6056_v62  ;;  %4977 = vmatmul.mubr.msk.f32.gmra.mrb[30].mxu0 %vm227_vm1, %v6059_v31  ;;  %v6092_v31 = vld [vmem:[%s5621_s7 + $0xe0] sm:$0xff] }
  0x7c   : > { %4755 = vmatprep.mubr.msk.f32.mxu1 %vm227_vm1, %v6062_v59  ;;  %4981 = vmatprep.mubr.msk.f32.mxu0 %vm227_vm1, %v5940_v0  ;;  %v6097_v0 = vld [vmem:[%s5621_s7 + $0xf0] sm:$0xff] }
  0x7f   : > { %4756 = vmatmul.mubr.msk.f32.gmra.mrb[16].mxu1 %vm227_vm1, %v6073_v33  ;;  %4982 = vmatmul.mubr.msk.f32.vlgmr.msra.gmra.mrb[0].mxu0 %vm227_vm1, %v5956_v3  ;;  %v877_v3 = vld [vmem:[%s5621_s7 + $0x2] sm:$0xff] }
  0x80   : > { %5030 = vmatpush3.msk.msra.mxu0 %vm324_vm0, %v5759_v28  ;;  %4758 = vmatprep.mubr.msk.f32.mxu1 %vm227_vm1, %v6076_v29  ;;  %v6110_v28 = vld [vmem:[%s5621_s7 + $0xf8] sm:$0xff] }
  0x81   : > { %4984 = vmatprep.mubr.msk.f32.mxu0 %vm227_vm1, %v5962_v5  ;;  %5079 = vmatprep.subr.msk.mxu0 %vm324_vm0, %v6081_v37  ;;  %v6113_v5 = vld [vmem:[%s5621_s7 + $0x108] sm:$0xff] }
  0x83   : > { %4759 = vmatmul.mubr.msk.f32.gmra.mrb[18].mxu1 %vm227_vm1, %v6092_v31  ;;  %4985 = vmatmul.mubr.msk.f32.gmra.mrb[2].mxu0 %vm227_vm1, %v5976_v7  ;;  %v6124_v7 = vld [vmem:[%s5621_s7 + $0x110] sm:$0xff] }
  0x84   : > { %4761 = vmatprep.mubr.msk.f32.mxu1 %vm227_vm1, %v6097_v0  ;;  %4987 = vmatprep.mubr.msk.f32.mxu0 %vm227_vm1, %v5982_v10  ;;  %v6127_v10 = vld [vmem:[%s5621_s7 + $0x120] sm:$0xff] }
  0x87   : > { %4762 = vmatmul.mubr.msk.f32.gmra.mrb[20].mxu1 %vm227_vm1, %v6110_v28  ;;  %4988 = vmatmul.mubr.msk.f32.gmra.mrb[4].mxu0 %vm227_vm1, %v5996_v57  ;;  %v6138_v57 = vld [vmem:[%s5621_s7 + $0x128] sm:$0xff] }
  0x88   : > { %4764 = vmatprep.mubr.msk.f32.mxu1 %vm227_vm1, %v6113_v5  ;;  %4990 = vmatprep.mubr.msk.f32.mxu0 %vm227_vm1, %v6002_v51  ;;  %v6141_v51 = vld [vmem:[%s5621_s7 + $0x138] sm:$0xff] }
  0x8b   : > { %4765 = vmatmul.mubr.msk.f32.gmra.mrb[22].mxu1 %vm227_vm1, %v6124_v7  ;;  %4991 = vmatmul.mubr.msk.f32.gmra.mrb[6].mxu0 %vm227_vm1, %v6016_v47  ;;  %v6152_v47 = vld [vmem:[%s5621_s7 + $0x140] sm:$0xff] }
  0x8c   : > { %4767 = vmatprep.mubr.msk.f32.mxu1 %vm227_vm1, %v6127_v10  ;;  %4993 = vmatprep.mubr.msk.f32.mxu0 %vm227_vm1, %v6022_v43  ;;  %v6155_v43 = vld [vmem:[%s5621_s7 + $0x150] sm:$0xff] }
  0x8f   : > { %4768 = vmatmul.mubr.msk.f32.gmra.mrb[24].mxu1 %vm227_vm1, %v6138_v57  ;;  %4994 = vmatmul.mubr.msk.f32.gmra.mrb[8].mxu0 %vm227_vm1, %v6036_v39  ;;  %v6166_v39 = vld [vmem:[%s5621_s7 + $0x158] sm:$0xff] }
  0x90   : > { %4770 = vmatprep.mubr.msk.f32.mxu1 %vm227_vm1, %v6141_v51  ;;  %4996 = vmatprep.mubr.msk.f32.mxu0 %vm227_vm1, %v6042_v35  ;;  %v6169_v35 = vld [vmem:[%s5621_s7 + $0x168] sm:$0xff] }
  0x93   : > { %4771 = vmatmul.mubr.msk.f32.gmra.mrb[26].mxu1 %vm227_vm1, %v6152_v47  ;;  %4997 = vmatmul.mubr.msk.f32.gmra.mrb[10].mxu0 %vm227_vm1, %v6056_v62  ;;  %v6180_v62 = vld [vmem:[%s5621_s7 + $0x170] sm:$0xff] }
  0x94   : > { %4773 = vmatprep.mubr.msk.f32.mxu1 %vm227_vm1, %v6155_v43  ;;  %4999 = vmatprep.mubr.msk.f32.mxu0 %vm227_vm1, %v6062_v59 }
  0x97   : > { %4774 = vmatmul.mubr.msk.f32.gmra.mrb[28].mxu1 %vm227_vm1, %v6166_v39  ;;  %5000 = vmatmul.mubr.msk.f32.gmra.mrb[12].mxu0 %vm227_vm1, %v6073_v33  ;;  %v878_v33 = vld [vmem:[%s5621_s7 + $0xa] sm:$0xff] }
  0x98   : > { %4776 = vmatprep.mubr.msk.f32.mxu1 %vm227_vm1, %v6169_v35  ;;  %5002 = vmatprep.mubr.msk.f32.mxu0 %vm227_vm1, %v6076_v29 }
  0x9b   : > { %4777 = vmatmul.mubr.msk.f32.gmra.mrb[30].mxu1 %vm227_vm1, %v6180_v62  ;;  %5003 = vmatmul.mubr.msk.f32.gmra.mrb[14].mxu0 %vm227_vm1, %v6092_v31 }
  0x9c   : > { %4781 = vmatprep.mubr.msk.f32.mxu1 %vm227_vm1, %v877_v3  ;;  %5005 = vmatprep.mubr.msk.f32.mxu0 %vm227_vm1, %v6097_v0  ;;  %v6720_v3 = vld [vmem:[#allocation25_spill] sm:$0xff] }
  0x9f   : > { %4782 = vmatmul.mubr.msk.f32.vlgmr.msra.gmra.mrb[0].mxu1 %vm227_vm1, %v878_v33  ;;  %5006 = vmatmul.mubr.msk.f32.gmra.mrb[16].mxu0 %vm227_vm1, %v6110_v28  ;;  %v4208_v33 = vld [vmem:[%s5621_s7 + $0x198] sm:$0xff] }
  0xa0   : > { %4830 = vmatpush3.msk.msra.mxu1 %vm324_vm0, %v5922_v61  ;;  %4784 = vmatprep.mubr.msk.f32.mxu1 %vm227_vm1, %v5737_v24  ;;  %v6235_v24 = vld [vmem:[%s5621_s7 + $0x180] sm:$0xff] }
  0xa1   : > { %5008 = vmatprep.mubr.msk.f32.mxu0 %vm227_vm1, %v6113_v5  ;;  %5129 = vmatprep.subr.msk.mxu1 %vm324_vm0, %v5600_v1  ;;  %v4209_v61 = vld [vmem:[%s5621_s7 + $0x1a0] sm:$0xff] }
  0xa3   : > { %4785 = vmatmul.mubr.msk.f32.gmra.mrb[2].mxu1 %vm227_vm1, %v5748_v25  ;;  %5009 = vmatmul.mubr.msk.f32.gmra.mrb[18].mxu0 %vm227_vm1, %v6124_v7  ;;  %v6246_v25 = vld [vmem:[%s5621_s7 + $0x188] sm:$0xff] }
  0xa4   : > { %4787 = vmatprep.mubr.msk.f32.mxu1 %vm227_vm1, %v5754_v27  ;;  %5011 = vmatprep.mubr.msk.f32.mxu0 %vm227_vm1, %v6127_v10 }
  0xa7   : > { %4788 = vmatmul.mubr.msk.f32.gmra.mrb[4].mxu1 %vm227_vm1, %v5772_v30  ;;  %5012 = vmatmul.mubr.msk.f32.gmra.mrb[20].mxu0 %vm227_vm1, %v6138_v57 }
  0xa8   : > { %4790 = vmatprep.mubr.msk.f32.mxu1 %vm227_vm1, %v5780_v32  ;;  %5014 = vmatprep.mubr.msk.f32.mxu0 %vm227_vm1, %v6141_v51 }
  0xab   : > { %4791 = vmatmul.mubr.msk.f32.gmra.mrb[6].mxu1 %vm227_vm1, %v5796_v34  ;;  %5015 = vmatmul.mubr.msk.f32.gmra.mrb[22].mxu0 %vm227_vm1, %v6152_v47 }
  0xac   : > { %4793 = vmatprep.mubr.msk.f32.mxu1 %vm227_vm1, %v5802_v36  ;;  %5017 = vmatprep.mubr.msk.f32.mxu0 %vm227_vm1, %v6155_v43 }
  0xaf   : > { %4794 = vmatmul.mubr.msk.f32.gmra.mrb[8].mxu1 %vm227_vm1, %v5816_v38  ;;  %5018 = vmatmul.mubr.msk.f32.gmra.mrb[24].mxu0 %vm227_vm1, %v6166_v39 }
  0xb0   : > { %4796 = vmatprep.mubr.msk.f32.mxu1 %vm227_vm1, %v5822_v40  ;;  %5020 = vmatprep.mubr.msk.f32.mxu0 %vm227_vm1, %v6169_v35 }
  0xb3   : > { %4797 = vmatmul.mubr.msk.f32.gmra.mrb[10].mxu1 %vm227_vm1, %v5836_v42  ;;  %5021 = vmatmul.mubr.msk.f32.gmra.mrb[26].mxu0 %vm227_vm1, %v6180_v62 }
  0xb4   : > { %4799 = vmatprep.mubr.msk.f32.mxu1 %vm227_vm1, %v5842_v44  ;;  %5023 = vmatprep.mubr.msk.f32.mxu0 %vm227_vm1, %v6235_v24 }
  0xb7   : > { %4800 = vmatmul.mubr.msk.f32.gmra.mrb[12].mxu1 %vm227_vm1, %v5856_v46  ;;  %5024 = vmatmul.mubr.msk.f32.gmra.mrb[28].mxu0 %vm227_vm1, %v6246_v25 }
  0xb8   : > { %4802 = vmatprep.mubr.msk.f32.mxu1 %vm227_vm1, %v5862_v48  ;;  %5026 = vmatprep.mubr.msk.f32.mxu0 %vm227_vm1, %v4208_v33  ;;  %v6721_v33 = vld [vmem:[#allocation13_spill] sm:$0xff] }
  0xbb   : > { %4803 = vmatmul.mubr.msk.f32.gmra.mrb[14].mxu1 %vm227_vm1, %v5876_v50  ;;  %5027 = vmatmul.mubr.msk.f32.gmra.mrb[30].mxu0 %vm227_vm1, %v4209_v61  ;;  %v6722_v61 = vld [vmem:[#allocation26_spill] sm:$0xff] }
  0xbc   : > { %4805 = vmatprep.mubr.msk.f32.mxu1 %vm227_vm1, %v5882_v52  ;;  %5031 = vmatprep.mubr.msk.f32.mxu0 %vm227_vm1, %v5630_v8  ;;  %v6704_v8 = vld [vmem:[#allocation30_spill] sm:$0xff] }
  0xbf   : > { %4806 = vmatmul.mubr.msk.f32.gmra.mrb[16].mxu1 %vm227_vm1, %v5896_v54  ;;  %5032 = vmatmul.mubr.msk.f32.vlgmr.msra.gmra.mrb[0].mxu0 %vm227_vm1, %v5645_v11  ;;  %v6705_v11 = vld [vmem:[#allocation5_spill] sm:$0xff] }
  0xc0   : > { %5080 = vmatpush3.msk.msra.mxu0 %vm324_vm0, %v6081_v37  ;;  %4808 = vmatprep.mubr.msk.f32.mxu1 %vm227_vm1, %v5900_v56  ;;  %v6719_v37 = vld [vmem:[#allocation12_spill] sm:$0xff] }
  0xc1   : > { %5034 = vmatprep.mubr.msk.f32.mxu0 %vm227_vm1, %v5651_v12  ;;  %v6706_v12 = vld [vmem:[#allocation18_spill] sm:$0xff] }
  0xc3   : > { %4809 = vmatmul.mubr.msk.f32.gmra.mrb[18].mxu1 %vm227_vm1, %v5911_v58  ;;  %5035 = vmatmul.mubr.msk.f32.gmra.mrb[2].mxu0 %vm227_vm1, %v5664_v13  ;;  %v6707_v13 = vld [vmem:[#allocation6_spill] sm:$0xff] }
  0xc4   : > { %4811 = vmatprep.mubr.msk.f32.mxu1 %vm227_vm1, %v5917_v60  ;;  %5037 = vmatprep.mubr.msk.f32.mxu0 %vm227_vm1, %v5667_v14  ;;  %v6708_v14 = vld [vmem:[#allocation19_spill] sm:$0xff] }
  0xc7   : > { %4812 = vmatmul.mubr.msk.f32.gmra.mrb[20].mxu1 %vm227_vm1, %v5935_v63  ;;  %5038 = vmatmul.mubr.msk.f32.gmra.mrb[4].mxu0 %vm227_vm1, %v5678_v15  ;;  %v6709_v15 = vld [vmem:[#allocation7_spill] sm:$0xff] }
  0xc8   : > { %4814 = vmatprep.mubr.msk.f32.mxu1 %vm227_vm1, %v5943_v2  ;;  %5040 = vmatprep.mubr.msk.f32.mxu0 %vm227_vm1, %v5681_v16  ;;  %v6710_v16 = vld [vmem:[#allocation20_spill] sm:$0xff] }
  0xcb   : > { %4815 = vmatmul.mubr.msk.f32.gmra.mrb[22].mxu1 %vm227_vm1, %v5959_v4  ;;  %5041 = vmatmul.mubr.msk.f32.gmra.mrb[6].mxu0 %vm227_vm1, %v5692_v17  ;;  %v6711_v17 = vld [vmem:[#allocation8_spill] sm:$0xff] }
  0xcc   : > { %4817 = vmatprep.mubr.msk.f32.mxu1 %vm227_vm1, %v5965_v6  ;;  %5043 = vmatprep.mubr.msk.f32.mxu0 %vm227_vm1, %v5695_v18  ;;  %v6712_v18 = vld [vmem:[#allocation21_spill] sm:$0xff] }
  0xcf   : > { %4818 = vmatmul.mubr.msk.f32.gmra.mrb[24].mxu1 %vm227_vm1, %v5979_v9  ;;  %5044 = vmatmul.mubr.msk.f32.gmra.mrb[8].mxu0 %vm227_vm1, %v5706_v19  ;;  %v6713_v19 = vld [vmem:[#allocation9_spill] sm:$0xff] }
  0xd0   : > { %4820 = vmatprep.mubr.msk.f32.mxu1 %vm227_vm1, %v5985_v55  ;;  %5046 = vmatprep.mubr.msk.f32.mxu0 %vm227_vm1, %v5709_v20  ;;  %v6714_v20 = vld [vmem:[#allocation22_spill] sm:$0xff] }
  0xd3   : > { %4821 = vmatmul.mubr.msk.f32.gmra.mrb[26].mxu1 %vm227_vm1, %v5999_v53  ;;  %5047 = vmatmul.mubr.msk.f32.gmra.mrb[10].mxu0 %vm227_vm1, %v5720_v21  ;;  %v6715_v21 = vld [vmem:[#allocation10_spill] sm:$0xff] }
  0xd4   : > { %4823 = vmatprep.mubr.msk.f32.mxu1 %vm227_vm1, %v6005_v49  ;;  %5049 = vmatprep.mubr.msk.f32.mxu0 %vm227_vm1, %v5723_v22  ;;  %v6717_v22 = vld [vmem:[#allocation11_spill] sm:$0xff] }
  0xd7   : > { %4824 = vmatmul.mubr.msk.f32.gmra.mrb[28].mxu1 %vm227_vm1, %v6019_v45  ;;  %5050 = vmatmul.mubr.msk.f32.gmra.mrb[12].mxu0 %vm227_vm1, %v5734_v23  ;;  %v6718_v23 = vld [vmem:[#allocation24_spill] sm:$0xff] }
  0xd8   : > { %4826 = vmatprep.mubr.msk.f32.mxu1 %vm227_vm1, %v6025_v41  ;;  %5052 = vmatprep.mubr.msk.f32.mxu0 %vm227_vm1, %v5751_v26 }
  0xdb   : > { %4827 = vmatmul.mubr.msk.f32.gmra.mrb[30].mxu1 %vm227_vm1, %v6704_v8  ;;  %5053 = vmatmul.mubr.msk.f32.gmra.mrb[14].mxu0 %vm227_vm1, %v6705_v11  ;;  %v6731_v8 = vld [vmem:[#allocation33_spill] sm:$0xff] }
  0xdc   : > { %4831 = vmatprep.mubr.msk.f32.mxu1 %vm227_vm1, %v6706_v12  ;;  %5055 = vmatprep.mubr.msk.f32.mxu0 %vm227_vm1, %v6707_v13  ;;  %v6723_v12 = vld [vmem:[#allocation14_spill] sm:$0xff] }
  0xdf   : > { %4832 = vmatmul.mubr.msk.f32.vlgmr.msra.gmra.mrb[0].mxu1 %vm227_vm1, %v6708_v14  ;;  %5056 = vmatmul.mubr.msk.f32.gmra.mrb[16].mxu0 %vm227_vm1, %v6709_v15  ;;  %v6724_v14 = vld [vmem:[#allocation27_spill] sm:$0xff] }
  0xe0   : > { %5130 = vmatpush3.msk.msra.mxu1 %vm324_vm0, %v5600_v1  ;;  %4834 = vmatprep.mubr.msk.f32.mxu1 %vm227_vm1, %v6710_v16  ;;  %v6716_v1 = vld [vmem:[#allocation23_spill] sm:$0xff] }
  0xe1   : > { %5058 = vmatprep.mubr.msk.f32.mxu0 %vm227_vm1, %v6711_v17  ;;  %v6725_v16 = vld [vmem:[#allocation15_spill] sm:$0xff] }
  0xe3   : > { %4835 = vmatmul.mubr.msk.f32.gmra.mrb[2].mxu1 %vm227_vm1, %v6712_v18  ;;  %5059 = vmatmul.mubr.msk.f32.gmra.mrb[18].mxu0 %vm227_vm1, %v6713_v19  ;;  %v6726_v18 = vld [vmem:[#allocation28_spill] sm:$0xff] }
  0xe4   : > { %4837 = vmatprep.mubr.msk.f32.mxu1 %vm227_vm1, %v6714_v20  ;;  %5061 = vmatprep.mubr.msk.f32.mxu0 %vm227_vm1, %v6715_v21  ;;  %v6727_v20 = vld [vmem:[#allocation16_spill] sm:$0xff] }
  0xe7   : > { %4838 = vmatmul.mubr.msk.f32.gmra.mrb[4].mxu1 %vm227_vm1, %v6716_v1  ;;  %5062 = vmatmul.mubr.msk.f32.gmra.mrb[20].mxu0 %vm227_vm1, %v6717_v22  ;;  %v6373_v1 = vld [vmem:[%s5621_s7 + $0x181] sm:$0xff] }
  0xe8   : > { %4840 = vmatprep.mubr.msk.f32.mxu1 %vm227_vm1, %v6718_v23  ;;  %5064 = vmatprep.mubr.msk.f32.mxu0 %vm227_vm1, %v6719_v37  ;;  %v6728_v23 = vld [vmem:[#allocation29_spill] sm:$0xff] }
  0xeb   : > { %4841 = vmatmul.mubr.msk.f32.gmra.mrb[6].mxu1 %vm227_vm1, %v6720_v3  ;;  %5065 = vmatmul.mubr.msk.f32.gmra.mrb[22].mxu0 %vm227_vm1, %v6721_v33  ;;  %v6729_v3 = vld [vmem:[#allocation17_spill] sm:$0xff] }
  0xec   : > { %4843 = vmatprep.mubr.msk.f32.mxu1 %vm227_vm1, %v6722_v61  ;;  %5067 = vmatprep.mubr.msk.f32.mxu0 %vm227_vm1, %v6723_v12  ;;  %v6730_v61 = vld [vmem:[#allocation31_spill] sm:$0xff] }
  0xef   : > { %4844 = vmatmul.mubr.msk.f32.gmra.mrb[8].mxu1 %vm227_vm1, %v6724_v14  ;;  %5068 = vmatmul.mubr.msk.f32.gmra.mrb[24].mxu0 %vm227_vm1, %v6725_v16  ;;  %v6384_v14 = vld [vmem:[%s5621_s7 + $0x189] sm:$0xff] }
  0xf0   : > { %4846 = vmatprep.mubr.msk.f32.mxu1 %vm227_vm1, %v6726_v18  ;;  %5070 = vmatprep.mubr.msk.f32.mxu0 %vm227_vm1, %v6727_v20  ;;  %v4274_v18 = vld [vmem:[%s5621_s7 + $0x199] sm:$0xff] }
  0xf3   : > { %4847 = vmatmul.mubr.msk.f32.gmra.mrb[10].mxu1 %vm227_vm1, %v6728_v23  ;;  %5071 = vmatmul.mubr.msk.f32.gmra.mrb[26].mxu0 %vm227_vm1, %v6729_v3  ;;  %v4275_v23 = vld [vmem:[%s5621_s7 + $0x1a1] sm:$0xff]  ;;  %v6732_v3 = vld [vmem:[#allocation35_spill] sm:$0xff] }
  0xf4   : > { %4849 = vmatprep.mubr.msk.f32.mxu1 %vm227_vm1, %v6730_v61  ;;  %5073 = vmatprep.mubr.msk.f32.mxu0 %vm227_vm1, %v6373_v1 }
  0xf7   : > { %4850 = vmatmul.mubr.msk.f32.gmra.mrb[12].mxu1 %vm227_vm1, %v6731_v8  ;;  %5074 = vmatmul.mubr.msk.f32.gmra.mrb[28].mxu0 %vm227_vm1, %v6384_v14 }
  0xf8   : > { %4852 = vmatprep.mubr.msk.f32.mxu1 %vm227_vm1, %v6062_v59  ;;  %5076 = vmatprep.mubr.msk.f32.mxu0 %vm227_vm1, %v4274_v18 }
  0xfb   : > { %4853 = vmatmul.mubr.msk.f32.gmra.mrb[14].mxu1 %vm227_vm1, %v6732_v3  ;;  %5077 = vmatmul.mubr.msk.f32.gmra.mrb[30].mxu0 %vm227_vm1, %v4275_v23 }
  0xfc   : > { %4855 = vmatprep.mubr.msk.f32.mxu1 %vm227_vm1, %v6076_v29  ;;  %5081 = vmatprep.mubr.msk.f32.mxu0 %vm227_vm1, %v5754_v27  ;;  %v6734_v27 = vld [vmem:[#allocation32_spill] sm:$0xff] }
  0xfd   : > { %v4340_v29 = vld [vmem:[%s5621_s7 + $0x19a] sm:$0xff] }
  0xff   : > { %4856 = vmatmul.mubr.msk.f32.gmra.mrb[16].mxu1 %vm227_vm1, %v6092_v31  ;;  %5082 = vmatmul.mubr.msk.f32.vlgmr.msra.gmra.mrb[0].mxu0 %vm227_vm1, %v5772_v30  ;;  %v6735_v30 = vld [vmem:[#allocation17_spill] sm:$0xff]  ;;  %v6736_v31 = vld [vmem:[#allocation34_spill] sm:$0xff] }
 0x100   : > { %4858 = vmatprep.mubr.msk.f32.mxu1 %vm227_vm1, %v6097_v0  ;;  %5084 = vmatprep.mubr.msk.f32.mxu0 %vm227_vm1, %v5780_v32  ;;  %v4341_v32 = vld [vmem:[%s5621_s7 + $0x1a2] sm:$0xff]  ;;  %s6578_s7 = scalar_lea.hbm %s6625_s2, %s4381_s4 }
 0x103   : > { %4859 = vmatmul.mubr.msk.f32.gmra.mrb[18].mxu1 %vm227_vm1, %v6110_v28  ;;  %5085 = vmatmul.mubr.msk.f32.gmra.mrb[2].mxu0 %vm227_vm1, %v5796_v34 }
 0x104   : > { %4861 = vmatprep.mubr.msk.f32.mxu1 %vm227_vm1, %v6113_v5  ;;  %5087 = vmatprep.mubr.msk.f32.mxu0 %vm227_vm1, %v5802_v36 }
 0x107   : > { %4862 = vmatmul.mubr.msk.f32.gmra.mrb[20].mxu1 %vm227_vm1, %v6124_v7  ;;  %5088 = vmatmul.mubr.msk.f32.gmra.mrb[4].mxu0 %vm227_vm1, %v5816_v38 }
 0x108   : > { %4864 = vmatprep.mubr.msk.f32.mxu1 %vm227_vm1, %v6127_v10  ;;  %5090 = vmatprep.mubr.msk.f32.mxu0 %vm227_vm1, %v5822_v40 }
 0x10b   : > { %4865 = vmatmul.mubr.msk.f32.gmra.mrb[22].mxu1 %vm227_vm1, %v6138_v57  ;;  %5091 = vmatmul.mubr.msk.f32.gmra.mrb[6].mxu0 %vm227_vm1, %v5836_v42 }
 0x10c   : > { %4867 = vmatprep.mubr.msk.f32.mxu1 %vm227_vm1, %v6141_v51  ;;  %5093 = vmatprep.mubr.msk.f32.mxu0 %vm227_vm1, %v5842_v44 }
 0x10f   : > { %4868 = vmatmul.mubr.msk.f32.gmra.mrb[24].mxu1 %vm227_vm1, %v6152_v47  ;;  %5094 = vmatmul.mubr.msk.f32.gmra.mrb[8].mxu0 %vm227_vm1, %v5856_v46 }
 0x110   : > { %4870 = vmatprep.mubr.msk.f32.mxu1 %vm227_vm1, %v6155_v43  ;;  %5096 = vmatprep.mubr.msk.f32.mxu0 %vm227_vm1, %v5862_v48 }
 0x113   : > { %4871 = vmatmul.mubr.msk.f32.gmra.mrb[26].mxu1 %vm227_vm1, %v6166_v39  ;;  %5097 = vmatmul.mubr.msk.f32.gmra.mrb[10].mxu0 %vm227_vm1, %v5876_v50 }
 0x114   : > { %4873 = vmatprep.mubr.msk.f32.mxu1 %vm227_vm1, %v6169_v35  ;;  %5099 = vmatprep.mubr.msk.f32.mxu0 %vm227_vm1, %v5882_v52 }
 0x117   : > { %4874 = vmatmul.mubr.msk.f32.gmra.mrb[28].mxu1 %vm227_vm1, %v6180_v62  ;;  %5100 = vmatmul.mubr.msk.f32.gmra.mrb[12].mxu0 %vm227_vm1, %v5896_v54 }
 0x118   : > { %4876 = vmatprep.mubr.msk.f32.mxu1 %vm227_vm1, %v6235_v24  ;;  %5102 = vmatprep.mubr.msk.f32.mxu0 %vm227_vm1, %v5900_v56 }
 0x11b   : > { %4877 = vmatmul.mubr.msk.f32.gmra.mrb[30].mxu1 %vm227_vm1, %v6246_v25  ;;  %5103 = vmatmul.mubr.msk.f32.gmra.mrb[14].mxu0 %vm227_vm1, %v5911_v58 }
 0x11c   : > { %4905 = vmatprep.mubr.msk.f32.mxu1 %vm227_vm1, %v5751_v26  ;;  %5105 = vmatprep.mubr.msk.f32.mxu0 %vm227_vm1, %v5917_v60  ;;  %v6733_v26 = vld [vmem:[#allocation30_spill] sm:$0xff] }
 0x11f   : > { %4906 = vmatmul.mubr.msk.f32.vlgmr.msra.gmra.mrb[16].mxu1 %vm227_vm1, %v6705_v11  ;;  %5106 = vmatmul.mubr.msk.f32.gmra.mrb[16].mxu0 %vm227_vm1, %v5935_v63 }
 0x120   : > { %4908 = vmatprep.mubr.msk.f32.mxu1 %vm227_vm1, %v6707_v13  ;;  %5108 = vmatprep.mubr.msk.f32.mxu0 %vm227_vm1, %v5943_v2 }
 0x123   : > { %4909 = vmatmul.mubr.msk.f32.gmra.mrb[18].mxu1 %vm227_vm1, %v6709_v15  ;;  %5109 = vmatmul.mubr.msk.f32.gmra.mrb[18].mxu0 %vm227_vm1, %v5959_v4 }
 0x124   : > { %4911 = vmatprep.mubr.msk.f32.mxu1 %vm227_vm1, %v6711_v17  ;;  %5111 = vmatprep.mubr.msk.f32.mxu0 %vm227_vm1, %v5965_v6 }
 0x127   : > { %4912 = vmatmul.mubr.msk.f32.gmra.mrb[20].mxu1 %vm227_vm1, %v6713_v19  ;;  %5112 = vmatmul.mubr.msk.f32.gmra.mrb[20].mxu0 %vm227_vm1, %v5979_v9 }
 0x128   : > { %4914 = vmatprep.mubr.msk.f32.mxu1 %vm227_vm1, %v6715_v21  ;;  %5114 = vmatprep.mubr.msk.f32.mxu0 %vm227_vm1, %v5985_v55 }
 0x12b   : > { %4915 = vmatmul.mubr.msk.f32.gmra.mrb[22].mxu1 %vm227_vm1, %v6717_v22  ;;  %5115 = vmatmul.mubr.msk.f32.gmra.mrb[22].mxu0 %vm227_vm1, %v5999_v53 }
 0x12c   : > { %4917 = vmatprep.mubr.msk.f32.mxu1 %vm227_vm1, %v6719_v37  ;;  %5117 = vmatprep.mubr.msk.f32.mxu0 %vm227_vm1, %v6005_v49 }
 0x12f   : > { %4918 = vmatmul.mubr.msk.f32.gmra.mrb[24].mxu1 %vm227_vm1, %v6721_v33  ;;  %5118 = vmatmul.mubr.msk.f32.gmra.mrb[24].mxu0 %vm227_vm1, %v6019_v45 }
 0x130   : > { %4920 = vmatprep.mubr.msk.f32.mxu1 %vm227_vm1, %v6723_v12  ;;  %5120 = vmatprep.mubr.msk.f32.mxu0 %vm227_vm1, %v6025_v41 }
 0x133   : > { %4921 = vmatmul.mubr.msk.f32.gmra.mrb[26].mxu1 %vm227_vm1, %v6725_v16  ;;  %5121 = vmatmul.mubr.msk.f32.gmra.mrb[26].mxu0 %vm227_vm1, %v6733_v26 }
 0x134   : > { %4923 = vmatprep.mubr.msk.f32.mxu1 %vm227_vm1, %v6727_v20  ;;  %5123 = vmatprep.mubr.msk.f32.mxu0 %vm227_vm1, %v6734_v27 }
 0x137   : > { %4924 = vmatmul.mubr.msk.f32.gmra.mrb[28].mxu1 %vm227_vm1, %v6735_v30  ;;  %5124 = vmatmul.mubr.msk.f32.gmra.mrb[28].mxu0 %vm227_vm1, %v6736_v31 }
 0x138   : > { %4926 = vmatprep.mubr.msk.f32.mxu1 %vm227_vm1, %v6373_v1  ;;  %5126 = vmatprep.mubr.msk.f32.mxu0 %vm227_vm1, %v4340_v29 }
 0x13b   : > { %4927 = vmatmul.mubr.msk.f32.gmra.mrb[30].mxu1 %vm227_vm1, %v6384_v14  ;;  %5127 = vmatmul.mubr.msk.f32.gmra.mrb[30].mxu0 %vm227_vm1, %v4341_v32 }
 0x1b2   : > { %v4833_v34 = vpop.f32.mrb[0].mxu1 }
 0x1b3   : > { %v1469_v35 = vpop.f32.mrb[1].mxu1 }
 0x1b6   : > { %v4836_v36 = vpop.f32.mrb[2].mxu1 }
 0x1b7   : > { %v1479_v38 = vpop.f32.mrb[3].mxu1 }
 0x1ba   : > { %v4839_v39 = vpop.f32.mrb[4].mxu1 }
 0x1bb   : > { %v1489_v40 = vpop.f32.mrb[5].mxu1 }
 0x1be   : > { %v4842_v41 = vpop.f32.mrb[6].mxu1 }
 0x1bf   : > { %v1499_v42 = vpop.f32.mrb[7].mxu1 }
 0x1c2   : > { %v4845_v43 = vpop.f32.mrb[8].mxu1 }
 0x1c3   : > { %v1509_v44 = vpop.f32.mrb[9].mxu1 }
 0x1c6   : > { %v4848_v45 = vpop.f32.mrb[10].mxu1 }
 0x1c7   : > { %v1519_v46 = vpop.f32.mrb[11].mxu1 }
 0x1ca   : > { %v4851_v47 = vpop.f32.mrb[12].mxu1 }
 0x1cb   : > { %v1529_v48 = vpop.f32.mrb[13].mxu1 }
 0x1ce   : > { %v4854_v49 = vpop.f32.mrb[14].mxu1 }
 0x1cf   : > { %v1539_v50 = vpop.f32.mrb[15].mxu1 }
 0x1d2   : > { %v5083_v51 = vpop.f32.mrb[0].mxu0 }
 0x1d3   : > { %v5131_v52 = vadd.f32 %v5083_v51, %v4833_v34  ;;  %v3422_v53 = vpop.f32.mrb[1].mxu0 }
 0x1d4   : > { %v5132_v54 = vadd.f32 %v3422_v53, %v1469_v35 }
 0x1d5   : > { %v3646_v0 = vmul.f32 0.2, %v5131_v52  ;;  %vm3614_vm3 = vcmp.ge.f32.partialorder %v5131_v52, 0.0 }
 0x1d6   : > { %v5086_v56 = vpop.f32.mrb[2].mxu0  ;;  %vm3613_vm2 = vcmp.ge.f32.partialorder %v5132_v54, 0.0  ;;  %v3645_v58 = vmul.f32 0.2, %v5132_v54 }
 0x1d7   : > { %v5133_v59 = vadd.f32 %v5086_v56, %v4836_v36  ;;  %v3432_v60 = vpop.f32.mrb[3].mxu0  ;;  %v3678_v7 = vsel %vm3614_vm3, %v5131_v52, %v3646_v0 }
 0x1d8   : > { %v5134_v62 = vadd.f32 %v3432_v60, %v1479_v38  ;;  %v3677_v63 = vsel %vm3613_vm2, %v5132_v54, %v3645_v58 }
 0x1d9   : > { %3709 = vxpose.xlu0.b32.start [1/16] (narrow) %v3677_v63, 8  ;;  %v3648_v25 = vmul.f32 0.2, %v5133_v59  ;;  %vm3616_vm5 = vcmp.ge.f32.partialorder %v5133_v59, 0.0 }
 0x1da   : > { %v5089_v2 = vpop.f32.mrb[4].mxu0  ;;  %v3647_v9 = vmul.f32 0.2, %v5134_v62  ;;  %vm3615_vm4 = vcmp.ge.f32.partialorder %v5134_v62, 0.0 }
 0x1db   : > { %v5135_v4 = vadd.f32 %v5089_v2, %v4839_v39  ;;  %v3442_v5 = vpop.f32.mrb[5].mxu0  ;;  %v3680_v17 = vsel %vm3616_vm5, %v5133_v59, %v3648_v25 }
 0x1dc   : > { %v5136_v6 = vadd.f32 %v3442_v5, %v1489_v40  ;;  %v3679_v24 = vsel %vm3615_vm4, %v5134_v62, %v3647_v9 }
 0x1dd   : > { %3710 = vxpose.xlu0.b32.cont [2/16] (narrow) %v3678_v7, 8  ;;  %v3650_v16 = vmul.f32 0.2, %v5135_v4  ;;  %vm3618_vm7 = vcmp.ge.f32.partialorder %v5135_v4, 0.0 }
 0x1de   : > { %v5092_v10 = vpop.f32.mrb[6].mxu0  ;;  %v3649_v19 = vmul.f32 0.2, %v5136_v6  ;;  %vm3617_vm6 = vcmp.ge.f32.partialorder %v5136_v6, 0.0 }
 0x1df   : > { %v5137_v55 = vadd.f32 %v5092_v10, %v4842_v41  ;;  %v3452_v57 = vpop.f32.mrb[7].mxu0  ;;  %v3682_v14 = vsel %vm3618_vm7, %v5135_v4, %v3650_v16 }
 0x1e0   : > { %v5138_v28 = vadd.f32 %v3452_v57, %v1499_v42  ;;  %v3681_v12 = vsel %vm3617_vm6, %v5136_v6, %v3649_v19 }
 0x1e1   : > { %3711 = vxpose.xlu0.b32.cont [3/16] (narrow) %v3679_v24, 8  ;;  %v3652_v31 = vmul.f32 0.2, %v5137_v55  ;;  %vm3620_vm9 = vcmp.ge.f32.partialorder %v5137_v55, 0.0 }
 0x1e2   : > { %v5095_v8 = vpop.f32.mrb[8].mxu0  ;;  %v3651_v18 = vmul.f32 0.2, %v5138_v28  ;;  %vm3619_vm8 = vcmp.ge.f32.partialorder %v5138_v28, 0.0 }
 0x1e3   : > { %v6526_v11 = vadd.f32 %v5095_v8, %v4845_v43  ;;  %v3462_v13 = vpop.f32.mrb[9].mxu0  ;;  %v3684_v40 = vsel %vm3620_vm9, %v5137_v55, %v3652_v31 }
 0x1e4   : > { %v5140_v15 = vadd.f32 %v3462_v13, %v1509_v44  ;;  %v3683_v30 = vsel %vm3619_vm8, %v5138_v28, %v3651_v18 }
 0x1e5   : > { %3712 = vxpose.xlu0.b32.cont [4/16] (narrow) %v3680_v17, 8  ;;  %vm3622_vm12 = vcmp.ge.f32.partialorder %v6526_v11, 0.0 }
 0x1e6   : > { %v5098_v21 = vpop.f32.mrb[10].mxu0  ;;  %v3653_v41 = vmul.f32 0.2, %v5140_v15  ;;  %vm3621_vm10 = vcmp.ge.f32.partialorder %v5140_v15, 0.0 }
 0x1e7   : > { %v6528_v22 = vadd.f32 %v5098_v21, %v4848_v45  ;;  %v3472_v37 = vpop.f32.mrb[11].mxu0 }
 0x1e8   : > { %v6530_v33 = vadd.f32 %v3472_v37, %v1519_v46 }
 0x1e9   : > { %3713 = vxpose.xlu0.b32.cont [5/16] (narrow) %v3681_v12, 8  ;;  %vm3624_vm0 = vcmp.ge.f32.partialorder %v6528_v22, 0.0  ;;  %v3656_v10 = vmul.f32 0.2, %v6528_v22 }
 0x1ea   : > { %v5101_v20 = vpop.f32.mrb[12].mxu0  ;;  %v3655_v0 = vmul.f32 0.2, %v6530_v33  ;;  %vm3623_vm14 = vcmp.ge.f32.partialorder %v6530_v33, 0.0 }
 0x1eb   : > { %v6532_v1 = vadd.f32 %v5101_v20, %v4851_v47  ;;  %v3482_v3 = vpop.f32.mrb[13].mxu0  ;;  %v3688_v17 = vsel %vm3624_vm0, %v6528_v22, %v3656_v10 }
 0x1ec   : > { %v6534_v61 = vadd.f32 %v3482_v3, %v1529_v48  ;;  %v3654_v48 = vmul.f32 0.2, %v6526_v11  ;;  %v3687_v57 = vsel %vm3623_vm14, %v6530_v33, %v3655_v0 }
 0x1ed   : > { %3714 = vxpose.xlu0.b32.cont [6/16] (narrow) %v3682_v14, 8  ;;  %vm3626_vm4 = vcmp.ge.f32.partialorder %v6532_v1, 0.0  ;;  %v3658_v18 = vmul.f32 0.2, %v6532_v1 }
 0x1ee   : > { %v5104_v23 = vpop.f32.mrb[14].mxu0  ;;  %v3686_v60 = vsel %vm3622_vm12, %v6526_v11, %v3654_v48  ;;  %v3657_v37 = vmul.f32 0.2, %v6534_v61  ;;  %vm3625_vm2 = vcmp.ge.f32.partialorder %v6534_v61, 0.0 }
 0x1ef   : > { %v6536_v26 = vadd.f32 %v5104_v23, %v4854_v49  ;;  %v3492_v27 = vpop.f32.mrb[15].mxu0 }
 0x1f0   : > { %v6538_v29 = vadd.f32 %v3492_v27, %v1539_v50  ;;  %v3685_v50 = vsel %vm3621_vm10, %v5140_v15, %v3653_v41  ;;  %v3689_v23 = vsel %vm3625_vm2, %v6534_v61, %v3657_v37 }
 0x1f1   : > { %3715 = vxpose.xlu0.b32.cont [7/16] (narrow) %v3683_v30, 8  ;;  %vm3628_vm8 = vcmp.ge.f32.partialorder %v6536_v26, 0.0 }
 0x1f2   : > { %v4907_v32 = vpop.f32.mrb[16].mxu1  ;;  %v5107_v34 = vpop.f32.mrb[16].mxu0  ;;  %v3659_v41 = vmul.f32 0.2, %v6538_v29  ;;  %vm3627_vm6 = vcmp.ge.f32.partialorder %v6538_v29, 0.0 }
 0x1f3   : > { %v5147_v35 = vadd.f32 %v5107_v34, %v4907_v32  ;;  %v1939_v36 = vpop.f32.mrb[17].mxu1  ;;  %v3502_v38 = vpop.f32.mrb[17].mxu0 }
 0x1f4   : > { %v5148_v39 = vadd.f32 %v3502_v38, %v1939_v36  ;;  %v3690_v38 = vsel %vm3626_vm4, %v6532_v1, %v3658_v18  ;;  %v3691_v1 = vsel %vm3627_vm6, %v6538_v29, %v3659_v41 }
 0x1f5   : > { %3716 = vxpose.xlu0.b32.cont [8/16] (narrow) %v3684_v40, 8  ;;  %v3662_v52 = vmul.f32 0.2, %v5147_v35  ;;  %vm3630_vm13 = vcmp.ge.f32.partialorder %v5147_v35, 0.0 }
 0x1f6   : > { %v4910_v42 = vpop.f32.mrb[18].mxu1  ;;  %v5110_v43 = vpop.f32.mrb[18].mxu0  ;;  %vm3629_vm11 = vcmp.ge.f32.partialorder %v5148_v39, 0.0  ;;  %v3661_v44 = vmul.f32 0.2, %v5148_v39 }
 0x1f7   : > { %v5149_v45 = vadd.f32 %v5110_v43, %v4910_v42  ;;  %v1949_v46 = vpop.f32.mrb[19].mxu1  ;;  %v3512_v47 = vpop.f32.mrb[19].mxu0  ;;  %v3694_v63 = vsel %vm3630_vm13, %v5147_v35, %v3662_v52 }
 0x1f8   : > { %v5150_v49 = vadd.f32 %v3512_v47, %v1949_v46  ;;  %v3693_v51 = vsel %vm3629_vm11, %v5148_v39, %v3661_v44  ;;  %v3660_v47 = vmul.f32 0.2, %v6536_v26 }
 0x1f9   : > { %3717 = vxpose.xlu0.b32.cont [9/16] (narrow) %v3685_v50, 8  ;;  %3741 = vxpose.xlu1.b32.start [1/16] (narrow) %v3693_v51, 8  ;;  %v3664_v24 = vmul.f32 0.2, %v5149_v45  ;;  %vm3632_vm1 = vcmp.ge.f32.partialorder %v5149_v45, 0.0 }
 0x1fa   : > { %v4913_v53 = vpop.f32.mrb[20].mxu1  ;;  %v5113_v54 = vpop.f32.mrb[20].mxu0  ;;  %v3663_v2 = vmul.f32 0.2, %v5150_v49  ;;  %vm3631_vm15 = vcmp.ge.f32.partialorder %v5150_v49, 0.0  ;;  %v3692_v51 = vsel %vm3628_vm8, %v6536_v26, %v3660_v47 }
 0x1fb   : > { %v5151_v56 = vadd.f32 %v5113_v54, %v4913_v53  ;;  %v1959_v58 = vpop.f32.mrb[21].mxu1  ;;  %v3522_v59 = vpop.f32.mrb[21].mxu0  ;;  %v3696_v21 = vsel %vm3632_vm1, %v5149_v45, %v3664_v24 }
 0x1fc   : > { %v5152_v62 = vadd.f32 %v3522_v59, %v1959_v58  ;;  %v3695_v28 = vsel %vm3631_vm15, %v5150_v49, %v3663_v2 }
 0x1fd   : > { %3718 = vxpose.xlu0.b32.cont [10/16] (narrow) %v3686_v60, 8  ;;  %3742 = vxpose.xlu1.b32.cont [2/16] (narrow) %v3694_v63, 8  ;;  %v3666_v30 = vmul.f32 0.2, %v5151_v56  ;;  %vm3634_vm5 = vcmp.ge.f32.partialorder %v5151_v56, 0.0 }
 0x1fe   : > { %v4916_v4 = vpop.f32.mrb[22].mxu1  ;;  %v5116_v5 = vpop.f32.mrb[22].mxu0  ;;  %v3665_v12 = vmul.f32 0.2, %v5152_v62  ;;  %vm3633_vm3 = vcmp.ge.f32.partialorder %v5152_v62, 0.0 }
 0x1ff   : > { %v6545_v6 = vadd.f32 %v5116_v5, %v4916_v4  ;;  %v1969_v7 = vpop.f32.mrb[23].mxu1  ;;  %v3532_v9 = vpop.f32.mrb[23].mxu0  ;;  %v3698_v40 = vsel %vm3634_vm5, %v5151_v56, %v3666_v30 }
 0x200   : > { %v5154_v55 = vadd.f32 %v3532_v9, %v1969_v7  ;;  %v3697_v27 = vsel %vm3633_vm3, %v5152_v62, %v3665_v12 }
 0x201   : > { %3719 = vxpose.xlu0.b32.cont [11/16] (narrow) %v3687_v57, 8  ;;  %3743 = vxpose.xlu1.b32.cont [3/16] (narrow) %v3695_v28, 8  ;;  %v3668_v50 = vmul.f32 0.2, %v6545_v6  ;;  %vm3636_vm9 = vcmp.ge.f32.partialorder %v6545_v6, 0.0 }
 0x202   : > { %v4919_v25 = vpop.f32.mrb[24].mxu1  ;;  %v5119_v8 = vpop.f32.mrb[24].mxu0  ;;  %v3667_v42 = vmul.f32 0.2, %v5154_v55  ;;  %vm3635_vm7 = vcmp.ge.f32.partialorder %v5154_v55, 0.0 }
 0x203   : > { %v6550_v11 = vadd.f32 %v5119_v8, %v4919_v25  ;;  %v1979_v13 = vpop.f32.mrb[25].mxu1  ;;  %v3542_v15 = vpop.f32.mrb[25].mxu0  ;;  %v3700_v52 = vsel %vm3636_vm9, %v6545_v6, %v3668_v50 }
 0x204   : > { %v5156_v19 = vadd.f32 %v3542_v15, %v1979_v13  ;;  %v3699_v49 = vsel %vm3635_vm7, %v5154_v55, %v3667_v42 }
 0x205   : > { %3720 = vxpose.xlu0.b32.cont [12/16] (narrow) %v3688_v17, 8  ;;  %3744 = vxpose.xlu1.b32.cont [4/16] (narrow) %v3696_v21, 8  ;;  %v3670_v29 = vmul.f32 0.2, %v6550_v11  ;;  %vm3638_vm11 = vcmp.ge.f32.partialorder %v6550_v11, 0.0 }
 0x206   : > { %v4922_v33 = vpop.f32.mrb[26].mxu1  ;;  %v5122_v16 = vpop.f32.mrb[26].mxu0  ;;  %v3669_v53 = vmul.f32 0.2, %v5156_v19  ;;  %vm3637_vm10 = vcmp.ge.f32.partialorder %v5156_v19, 0.0 }
 0x207   : > { %v5157_v20 = vadd.f32 %v5122_v16, %v4922_v33  ;;  %v1989_v3 = vpop.f32.mrb[27].mxu1  ;;  %v3552_v14 = vpop.f32.mrb[27].mxu0  ;;  %v3702_v56 = vsel %vm3638_vm11, %v6550_v11, %v3670_v29 }
 0x208   : > { %v5158_v22 = vadd.f32 %v3552_v14, %v1989_v3  ;;  %v3701_v54 = vsel %vm3637_vm10, %v5156_v19, %v3669_v53 }
 0x209   : > { %3721 = vxpose.xlu0.b32.cont [13/16] (narrow) %v3689_v23, 8  ;;  %3745 = vxpose.xlu1.b32.cont [5/16] (narrow) %v3697_v27, 8  ;;  %v3672_v60 = vmul.f32 0.2, %v5157_v20  ;;  %vm3640_vm13 = vcmp.ge.f32.partialorder %v5157_v20, 0.0 }
 0x20a   : > { %v4925_v31 = vpop.f32.mrb[28].mxu1  ;;  %v5125_v32 = vpop.f32.mrb[28].mxu0  ;;  %v3671_v58 = vmul.f32 0.2, %v5158_v22  ;;  %vm3639_vm12 = vcmp.ge.f32.partialorder %v5158_v22, 0.0 }
 0x20b   : > { %v5159_v34 = vadd.f32 %v5125_v32, %v4925_v31  ;;  %v1999_v35 = vpop.f32.mrb[29].mxu1  ;;  %v3562_v36 = vpop.f32.mrb[29].mxu0  ;;  %v3704_v26 = vsel %vm3640_vm13, %v5157_v20, %v3672_v60 }
 0x20c   : > { %v5160_v39 = vadd.f32 %v3562_v36, %v1999_v35  ;;  %v3703_v59 = vsel %vm3639_vm12, %v5158_v22, %v3671_v58 }
 0x20d   : > { %3722 = vxpose.xlu0.b32.cont [14/16] (narrow) %v3690_v38, 8  ;;  %3746 = vxpose.xlu1.b32.cont [6/16] (narrow) %v3698_v40, 8  ;;  %v3674_v0 = vmul.f32 0.2, %v5159_v34  ;;  %vm3642_vm15 = vcmp.ge.f32.partialorder %v5159_v34, 0.0 }
 0x20e   : > { %v4928_v61 = vpop.f32.mrb[30].mxu1  ;;  %v5128_v43 = vpop.f32.mrb[30].mxu0  ;;  %v3673_v62 = vmul.f32 0.2, %v5160_v39  ;;  %vm3641_vm14 = vcmp.ge.f32.partialorder %v5160_v39, 0.0 }
 0x20f   : > { %v5161_v44 = vadd.f32 %v5128_v43, %v4928_v61  ;;  %v2009_v45 = vpop.f32.mrb[31].mxu1  ;;  %v3572_v46 = vpop.f32.mrb[31].mxu0  ;;  %v3706_v2 = vsel %vm3642_vm15, %v5159_v34, %v3674_v0 }
 0x210   : > { %v5162_v48 = vadd.f32 %v3572_v46, %v2009_v45  ;;  %v3705_v63 = vsel %vm3641_vm14, %v5160_v39, %v3673_v62 }
 0x211   : > { %3723 = vxpose.xlu0.b32.cont [15/16] (narrow) %v3691_v1, 8  ;;  %3747 = vxpose.xlu1.b32.cont [7/16] (narrow) %v3699_v49, 8  ;;  %v3676_v6 = vmul.f32 0.2, %v5161_v44  ;;  %vm3644_vm1 = vcmp.ge.f32.partialorder %v5161_v44, 0.0 }
 0x212   : > { %v3675_v4 = vmul.f32 0.2, %v5162_v48  ;;  %vm3643_vm0 = vcmp.ge.f32.partialorder %v5162_v48, 0.0 }
 0x213   : > { %v3708_v7 = vsel %vm3644_vm1, %v5161_v44, %v3676_v6 }
 0x214   : > { %v3707_v5 = vsel %vm3643_vm0, %v5162_v48, %v3675_v4 }
 0x215   : > { %3724 = vxpose.xlu0.b32.end [16/16] (narrow) %v3692_v51, 8  ;;  %3748 = vxpose.xlu1.b32.cont [8/16] (narrow) %v3700_v52, 8 }
 0x219   : > { %3749 = vxpose.xlu1.b32.cont [9/16] (narrow) %v3701_v54, 8 }
 0x21d   : > { %3750 = vxpose.xlu1.b32.cont [10/16] (narrow) %v3702_v56, 8 }
 0x221   : > { %3751 = vxpose.xlu1.b32.cont [11/16] (narrow) %v3703_v59, 8 }
 0x225   : > { %3752 = vxpose.xlu1.b32.cont [12/16] (narrow) %v3704_v26, 8 }
 0x229   : > { %3753 = vxpose.xlu1.b32.cont [13/16] (narrow) %v3705_v63, 8 }
 0x22d   : > { %3754 = vxpose.xlu1.b32.cont [14/16] (narrow) %v3706_v2, 8 }
 0x231   : > { %3755 = vxpose.xlu1.b32.cont [15/16] (narrow) %v3707_v5, 8 }
 0x235   : > { %3756 = vxpose.xlu1.b32.end [16/16] (narrow) %v3708_v7, 8 }
 0x259   : > { %v3725_v9 = vpop.trf.xlu0 }
 0x25a   : > { %3773 = vst [vmem:[%s150_s30] sm:$0xff] %v3725_v9 }
 0x279   : > { %v3757_v10 = vpop.trf.xlu1 }
 0x27a   : > { %3774 = vst [vmem:[%s150_s30 + $0x8] sm:$0xff] %v3757_v10 }
 0x27b   : > { %5456 = shalt.err (!%p5453_p5)
}
 0x27c   : > { %s5457_s20 = scalar_lea.hbm %s6578_s7, 256  ;;  %s5461_s25 = scalar_lea.hbm %s6625_s2, 512 }
 0x27d   : > { %p5458_p6 = scmp.ne.s32.totalorder %s6578_s7, %s5457_s20  ;;  %p5462_p10 = scmp.lt.u32.totalorder %s6578_s7, %s6625_s2 }
 0x27e   : > { %p5463_p11 = scmp.lt.u32.totalorder %s5461_s25, %s5457_s20  ;;  %p5465_p13 = scmp.lt.u32.totalorder %s5457_s20, %s6578_s7 }
 0x27f   : > { %p5459_p7 = pnand %p5458_p6, %p5579_p4 }
 0x280   : > { %p5464_p12 = por %p5463_p11, %p5462_p10 }
 0x281   : > { %p5460_p9 = pneg %p5459_p7 }
 0x282   : > { %p5466_p0 = por %p5465_p13, %p5464_p12 }
 0x284   : > { %p5467_p1 = pnand %p5466_p0, %p5460_p9 }
 0x286   : > { %5470 = shalt.err (!%p5467_p1)
}
 0x287   : > { %5388 = dma.vmem_to_hbm [thread:$0]  (%p5579_p4), %s6573_s3, 256, %s6578_s7, %s3776_s8  }
 0x288 PF: > { %p5394_p2 = scmp.ge.s32.totalorder %s5521_s14, 2  ;;  %s3804_s28 = sand.u32 1, %s5501_s9  }
 0x289   : > { %s3805_s29 = scalar_lea.sflag [#allocation3], %s3804_s28 }
 0x28a   : > { %p5391_p3 = pnand %p5394_p2, %p5586_p8 }
 0x28c   : > { %5496 = dma.done.wait (!%p5391_p3), %s3805_s29, 256  }
 0x28d   : > { %5498 = vsyncadd (!%p5391_p3), %s3805_s29, 4294967040  ;;  %s15_s14 = sadd.s32 1, %s5521_s14   ;;  %s6737_s9 = smov %s5505_s10 }
 0x28e   : > { %p12_p5 = scmp.ge.s32.totalorder %s15_s14, 4   ;;  %s6738_s10 = smov %s5509_s11 }
 0x28f   : > { %s6739_s11 = smov %s5592_s22  ;;  %s6740_s12 = smov %s5517_s13 }
 0x290   : > { %s6741_s13 = smov %s6743_s17  ;;  %14 = sbr.rel (!%p12_p5) target bundleno = 4 (0x4), region = 74 }
 0x297   :  { %3810 = vsyncpa [#allocation3], 1 }
 0x298   :  { %3812 = vsyncpa [#allocation3 + $0x1], 1 }

</bundles_post_ra>
